<compile_context>
chip_gen: v7x
topology: tpu7x:2x2x1
jax: 0.10.0
libtpu: 0.0.40
codegen_flags: <defaults>
</compile_context>

<pallas_src>
import functools

import numpy as np
import jax
import jax.numpy as jnp
from jax.experimental import pallas as pl
from jax.experimental.pallas import tpu as pltpu

LANES = 128  # lane-dense packing width for the weight slab and the output


# ------------------------------------------------------------------
# Fused Pallas kernel (one grid step == one clip)
# ------------------------------------------------------------------

def dsnet_fused_kernel(x_ref, w_ref, out_ref, *, num_head, fc_depth,
                       attention_depth, feat, hid, seq_len, num_scales, offs):
    x = x_ref[0]                                     # (S, F)
    dh = feat // num_head
    inv_sqrt_dh = 1.0 / float(np.sqrt(dh))

    r = offs["wqkv"]
    wqkv = w_ref[r:r + feat, :3 * feat]              # (F, 3F)
    r = offs["wo"]
    wo = w_ref[r:r + feat, :feat]                    # (F, F)

    def mha(h):
        qkv = jnp.dot(h, wqkv, preferred_element_type=jnp.float32)   # (S, 3F)
        q = qkv[:, :feat] * inv_sqrt_dh              # pre-scale once, not per head
        k = qkv[:, feat:2 * feat]
        v = qkv[:, 2 * feat:3 * feat]
        ctxs = []
        for hh in range(num_head):
            sl = slice(hh * dh, (hh + 1) * dh)
            logits = jnp.dot(q[:, sl], k[:, sl].T,
                             preferred_element_type=jnp.float32)     # (S, S)
            logits = logits - jnp.max(logits, axis=-1, keepdims=True)
            p = jnp.exp(logits)
            p = p * pl.reciprocal(jnp.sum(p, axis=-1, keepdims=True),
                                  approx=True)
            ctxs.append(jnp.dot(p, v[:, sl],
                                preferred_element_type=jnp.float32))
        ctx = jnp.concatenate(ctxs, axis=-1)         # (S, F) — one Wo matmul
        return jnp.dot(ctx, wo, preferred_element_type=jnp.float32)

    # x = x + base_model1(x); attention_block repeats the SAME module (shared
    # weights) and the module discards outputs of odd-indexed layers -> dead
    # passes are skipped entirely (identical result).
    h = x + mha(x)
    for i in range(attention_depth - 1):
        if i % 2 == 0:
            h = h + mha(h)

    rv = offs["vecs"]
    b_fc1 = w_ref[rv + 0, :hid]
    b_fcb = w_ref[rv + 1, :hid]
    gamma = w_ref[rv + 2, :hid]
    beta = w_ref[rv + 3, :hid]
    b_head = w_ref[rv + 4, :]                        # (LANES,), cols >=3 are 0

    # fc1 then fc_depth applications of the *shared* fc_block
    # (Linear -> ReLU -> Dropout(eval: identity) -> LayerNorm).
    r = offs["w_fc1"]
    z = jnp.dot(h, w_ref[r:r + feat, :hid],
                preferred_element_type=jnp.float32) + b_fc1
    r = offs["w_fcb"]
    w_fcb = w_ref[r:r + hid, :hid]
    for _ in range(fc_depth):
        t = jnp.dot(z, w_fcb, preferred_element_type=jnp.float32) + b_fcb
        t = jnp.maximum(t, 0.0)
        mu = jnp.mean(t, axis=-1, keepdims=True)
        var = jnp.mean((t - mu) * (t - mu), axis=-1, keepdims=True)
        z = (t - mu) * jax.lax.rsqrt(var + 1e-5) * gamma + beta

    # Head: AvgPool1d for every anchor scale as ONE stacked matmul against the
    # precomputed (NS*S, S) pooling matrix (rows already truncated to match
    # the trailing `[:-1]`), then a single fused cls|loc matmul.  The head
    # weight is pre-padded to (H, LANES) so the result is a full lane-dense
    # (NS*S, LANES) slab -> unmasked stores; wrapper slices the 3 real cols.
    # TODO(synk): for large SEQ the O(S^2) pooling matrix should be replaced
    # by an in-kernel sliding-window / prefix-sum formulation.
    r = offs["p_flat"]
    pooled = jnp.dot(w_ref[r:r + num_scales * seq_len, :seq_len], z,
                     preferred_element_type=jnp.float32)             # (NS*S, H)
    r = offs["w_head"]
    w_head = w_ref[r:r + hid, :]                      # (H, LANES), cols >=3 are 0
    out_pad = jnp.dot(pooled, w_head,
                      preferred_element_type=jnp.float32) + b_head   # (NS*S, LANES)
    col = jax.lax.broadcasted_iota(jnp.int32, out_pad.shape, 1)
    out_ref[0] = jnp.where(col == 0, jax.nn.sigmoid(out_pad), out_pad)


# ------------------------------------------------------------------
# One-time parameter packing (runs OUTSIDE the jitted per-call path)
# ------------------------------------------------------------------

def pack_params(params, p_stack, *, feat, hid, seq_len, num_scales):
    """Pack every weight/bias/pooling array into one lane-dense (R, 128) slab."""
    assert max(3 * feat, feat, hid, seq_len, 3) <= LANES, \
        "packing assumes every parameter width fits in one 128-lane tile"

    offs = {}
    blocks = []
    row = 0

    def add(name, arr):
        nonlocal row
        arr = np.asarray(arr, np.float32)
        h, w = arr.shape
        pad = np.zeros((h, LANES), np.float32)
        pad[:, :w] = arr
        offs[name] = row
        blocks.append(pad)
        row += h

    wqkv = np.concatenate([np.asarray(params["wq"]), np.asarray(params["wk"]),
                           np.asarray(params["wv"])], axis=1)          # (F, 3F)
    add("wqkv", wqkv)
    add("wo", params["wo"])
    add("w_fc1", params["w_fc1"])
    add("w_fcb", params["w_fcb"])
    w_head = np.concatenate([np.asarray(params["w_cls"]),
                             np.asarray(params["w_loc"])], axis=1)     # (H, 3)
    add("w_head", w_head)
    p_flat = np.asarray(p_stack).reshape(num_scales * seq_len, seq_len)
    add("p_flat", p_flat)

    vecs = np.zeros((5, LANES), np.float32)
    vecs[0, :hid] = np.asarray(params["b_fc1"]).reshape(-1)
    vecs[1, :hid] = np.asarray(params["b_fcb"]).reshape(-1)
    vecs[2, :hid] = np.asarray(params["gamma"]).reshape(-1)
    vecs[3, :hid] = np.asarray(params["beta"]).reshape(-1)
    vecs[4, :3] = np.concatenate([np.asarray(params["b_cls"]).reshape(-1),
                                  np.asarray(params["b_loc"]).reshape(-1)])
    offs["vecs"] = row
    blocks.append(vecs)
    row += 5

    total = int(np.ceil(row / 8) * 8)                # keep sublane-aligned rows
    if total > row:
        blocks.append(np.zeros((total - row, LANES), np.float32))
    slab = np.concatenate(blocks, axis=0)            # (R, 128)
    return jnp.asarray(slab), offs


# ------------------------------------------------------------------
# Wrapper (jit this; takes the prepacked slab)
# ------------------------------------------------------------------

def dsnet_forward(x, w_slab, *, offs, num_head, fc_depth, attention_depth,
                  feat, hid, seq_len, num_scales):
    batch = x.shape[0]
    rows = w_slab.shape[0]

    out = pl.pallas_call(
        functools.partial(dsnet_fused_kernel, num_head=num_head,
                          fc_depth=fc_depth, attention_depth=attention_depth,
                          feat=feat, hid=hid, seq_len=seq_len,
                          num_scales=num_scales, offs=offs),
        out_shape=jax.ShapeDtypeStruct((batch, num_scales * seq_len, LANES),
                                       jnp.float32),
        grid=(batch,),
        in_specs=[
            pl.BlockSpec((1, seq_len, feat), lambda b: (b, 0, 0)),
            pl.BlockSpec((rows, LANES), lambda b: (0, 0)),   # resident weights
        ],
        out_specs=pl.BlockSpec((1, num_scales * seq_len, LANES),
                               lambda b: (b, 0, 0)),
        compiler_params=pltpu.CompilerParams(
            dimension_semantics=("parallel",)),
    )(x, w_slab)

    out3 = out[..., :3].reshape(batch, num_scales, seq_len, 3)
    pred_cls = jnp.transpose(out3[..., 0], (0, 2, 1))         # (B, S, NS)
    pred_loc = jnp.transpose(out3[..., 1:3], (0, 2, 1, 3))    # (B, S, NS, 2)
    return pred_cls, pred_loc


# ------------------------------------------------------------------
# Parameter init / pooling matrices / pure-JAX reference
# ------------------------------------------------------------------

def init_params(key, feat, hid):
    ks = jax.random.split(key, 8)

    def w(k, shape):
        return jax.random.normal(k, shape, jnp.float32) * 0.1

    return dict(
        wq=w(ks[0], (feat, feat)), wk=w(ks[1], (feat, feat)),
        wv=w(ks[2], (feat, feat)), wo=w(ks[3], (feat, feat)),
        w_fc1=w(ks[4], (feat, hid)), b_fc1=jnp.zeros((1, hid), jnp.float32),
        w_fcb=w(ks[5], (hid, hid)), b_fcb=jnp.zeros((1, hid), jnp.float32),
        gamma=jnp.ones((1, hid), jnp.float32),
        beta=jnp.zeros((1, hid), jnp.float32),
        w_cls=w(ks[6], (hid, 1)), b_cls=jnp.zeros((1, 1), jnp.float32),
        w_loc=w(ks[7], (hid, 2)), b_loc=jnp.zeros((1, 2), jnp.float32),
    )


def pool_matrix(seq_len, scale):
    # AvgPool1d(scale, stride=1, padding=scale//2, count_include_pad=True)
    pad = scale // 2
    out_len = seq_len + 2 * pad - scale + 1
    p = np.zeros((out_len, seq_len), dtype=np.float32)
    for t in range(out_len):
        lo = max(0, t - pad)
        hi = min(seq_len, t - pad + scale)
        if hi > lo:
            p[t, lo:hi] = 1.0 / scale
    return p


def build_pool_stack(seq_len, anchor_scales):
    mats = []
    for s in anchor_scales:
        assert s % 2 == 0, "module's cat+[:-1]+view only lines up for even scales"
        p = pool_matrix(seq_len, s)
        assert p.shape[0] == seq_len + 1
        mats.append(p[:seq_len])   # matches the trailing `[:-1]`
    return np.stack(mats, axis=0)


def ref_forward_single(x_clip, params, p_stack, *, num_head, fc_depth,
                       attention_depth):
    """Pure-JAX reference for ONE clip (batch=1 semantics of the module)."""
    def ref_mha(h):
        q = h @ params["wq"]
        k = h @ params["wk"]
        v = h @ params["wv"]
        feat = h.shape[1]
        dh = feat // num_head
        outs = []
        for hh in range(num_head):
            qh = q[:, hh * dh:(hh + 1) * dh]
            kh = k[:, hh * dh:(hh + 1) * dh]
            vh = v[:, hh * dh:(hh + 1) * dh]
            a = jax.nn.softmax(qh @ kh.T / np.sqrt(dh), axis=-1)
            outs.append(a @ vh)
        return jnp.concatenate(outs, axis=-1) @ params["wo"]

    h = x_clip
    h = h + ref_mha(h)
    for i in range(attention_depth - 1):
        out = ref_mha(h)
        if i % 2 == 0:
            h = h + out
    z = h @ params["w_fc1"] + params["b_fc1"]
    for _ in range(fc_depth):
        t = jnp.maximum(z @ params["w_fcb"] + params["b_fcb"], 0.0)
        mu = t.mean(-1, keepdims=True)
        var = ((t - mu) ** 2).mean(-1, keepdims=True)
        z = (t - mu) / jnp.sqrt(var + 1e-5) * params["gamma"] + params["beta"]
    pooled = jnp.einsum("nts,sh->nth", jnp.asarray(p_stack), z)
    cls = jax.nn.sigmoid(pooled @ params["w_cls"] + params["b_cls"])[..., 0].T
    loc = jnp.transpose(pooled @ params["w_loc"] + params["b_loc"], (1, 0, 2))
    return cls, loc


# ------------------------------------------------------------------

if __name__ == "__main__":
    SEQ, FEAT, HID, NUM_HEAD = 16, 32, 32, 4
    ANCHOR_SCALES = (4, 8)
    FC_DEPTH, ATT_DEPTH = 2, 3
    BATCH = 2   # independent clips, processed over a parallel grid axis

    key = jax.random.PRNGKey(0)
    k_p, k_x = jax.random.split(key)
    params = init_params(k_p, FEAT, HID)
    p_stack = build_pool_stack(SEQ, ANCHOR_SCALES)

    # One-time packing, hoisted out of the per-call jitted path.
    w_slab, offs = pack_params(params, p_stack, feat=FEAT, hid=HID,
                               seq_len=SEQ, num_scales=len(ANCHOR_SCALES))

    x = jax.random.normal(k_x, (BATCH, SEQ, FEAT), jnp.float32)

    fwd = jax.jit(functools.partial(
        dsnet_forward, offs=offs, num_head=NUM_HEAD, fc_depth=FC_DEPTH,
        attention_depth=ATT_DEPTH, feat=FEAT, hid=HID, seq_len=SEQ,
        num_scales=len(ANCHOR_SCALES)))
    pred_cls, pred_loc = fwd(x, w_slab)
    jax.block_until_ready((pred_cls, pred_loc))

    assert pred_cls.shape == (BATCH, SEQ, len(ANCHOR_SCALES))
    assert pred_loc.shape == (BATCH, SEQ, len(ANCHOR_SCALES), 2)

    # Per-clip check against the pure-JAX reference (module is batch=1).
    for b in range(BATCH):
        ref_cls, ref_loc = ref_forward_single(
            x[b], params, p_stack,
            num_head=NUM_HEAD, fc_depth=FC_DEPTH, attention_depth=ATT_DEPTH)
        # Tolerance slightly loosened vs exact math because the kernel uses
        # the EUP approximate reciprocal for the softmax denominator.
        np.testing.assert_allclose(np.asarray(pred_cls[b]), np.asarray(ref_cls),
                                   rtol=2e-3, atol=2e-3)
        np.testing.assert_allclose(np.asarray(pred_loc[b]), np.asarray(ref_loc),
                                   rtol=2e-3, atol=2e-3)

    print("KERNEL_OK")
</pallas_src>

<mosaic_0001>
module attributes {stable_mosaic.version = 11 : i64} {
  func.func @dsnet_fused_kernel(%arg0: i32, %arg1: memref<1x16x32xf32, #tpu.memory_space<vmem>>, %arg2: memref<200x128xf32, #tpu.memory_space<vmem>>, %arg3: memref<1x32x128xf32, #tpu.memory_space<vmem>>) attributes {dimension_semantics = [#tpu.dimension_semantics<parallel>], iteration_bounds = array<i64: 2>, scalar_prefetch = 0 : i64, scratch_operands = 0 : i64, tpu.core_type = #tpu.core_type<tc>, window_params = [{transform_indices = @transform_0, window_bounds = array<i64: 1, 16, 32>}, {pipeline_mode = #tpu.pipeline_mode<synchronous>, transform_indices = @transform_1, window_bounds = array<i64: 200, 128>}, {transform_indices = @transform_2, window_bounds = array<i64: 1, 32, 128>}]} {
    %c0 = arith.constant 0 : index
    %c0_0 = arith.constant 0 : index
    %c0_1 = arith.constant 0 : index
    %0 = vector.load %arg1[%c0, %c0_0, %c0_1] : memref<1x16x32xf32, #tpu.memory_space<vmem>>, vector<1x16x32xf32>
    %1 = vector.shape_cast %0 : vector<1x16x32xf32> to vector<16x32xf32>
    %c0_2 = arith.constant 0 : index
    %c0_3 = arith.constant 0 : index
    %2 = vector.load %arg2[%c0_2, %c0_3] : memref<200x128xf32, #tpu.memory_space<vmem>>, vector<32x96xf32>
    %c32 = arith.constant 32 : index
    %c0_4 = arith.constant 0 : index
    %3 = vector.load %arg2[%c32, %c0_4] : memref<200x128xf32, #tpu.memory_space<vmem>>, vector<32x32xf32>
    %cst = arith.constant dense<0.000000e+00> : vector<16x96xf32>
    %4 = tpu.matmul %1, %2, %cst {dimension_numbers = #tpu.dot_dimension_numbers<[1], [0], [0], [1], [0, 0, 1, 1], [], []>} : vector<16x32xf32>, vector<32x96xf32>, vector<16x96xf32> -> vector<16x96xf32>
    %5 = vector.extract_strided_slice %4 {offsets = [0, 0], sizes = [16, 32], strides = [1, 1]} : vector<16x96xf32> to vector<16x32xf32>
    %cst_5 = arith.constant 0.353553385 : f32
    %6 = vector.broadcast %cst_5 : f32 to vector<16x32xf32>
    %7 = arith.mulf %5, %6 : vector<16x32xf32>
    %8 = vector.extract_strided_slice %4 {offsets = [0, 32], sizes = [16, 32], strides = [1, 1]} : vector<16x96xf32> to vector<16x32xf32>
    %9 = vector.extract_strided_slice %4 {offsets = [0, 64], sizes = [16, 32], strides = [1, 1]} : vector<16x96xf32> to vector<16x32xf32>
    %10 = vector.extract_strided_slice %7 {offsets = [0, 0], sizes = [16, 8], strides = [1, 1]} : vector<16x32xf32> to vector<16x8xf32>
    %11 = vector.extract_strided_slice %8 {offsets = [0, 0], sizes = [16, 8], strides = [1, 1]} : vector<16x32xf32> to vector<16x8xf32>
    %12 = tpu.transpose %11, [1, 0] : vector<16x8xf32> -> vector<8x16xf32>
    %cst_6 = arith.constant dense<0.000000e+00> : vector<16x16xf32>
    %13 = tpu.matmul %10, %12, %cst_6 {dimension_numbers = #tpu.dot_dimension_numbers<[1], [0], [0], [1], [0, 0, 1, 1], [], []>} : vector<16x8xf32>, vector<8x16xf32>, vector<16x16xf32> -> vector<16x16xf32>
    %cst_7 = arith.constant dense<0xFF800000> : vector<16xf32>
    %14 = vector.multi_reduction <maximumf>, %13, %cst_7 [1] : vector<16x16xf32> to vector<16xf32>
    %15 = vector.shape_cast %14 : vector<16xf32> to vector<16x1xf32>
    %16 = vector.broadcast %15 : vector<16x1xf32> to vector<16x16xf32>
    %17 = arith.subf %13, %16 : vector<16x16xf32>
    %18 = math.exp %17 : vector<16x16xf32>
    %cst_8 = arith.constant dense<0.000000e+00> : vector<16xf32>
    %19 = vector.multi_reduction <add>, %18, %cst_8 [1] : vector<16x16xf32> to vector<16xf32>
    %20 = vector.shape_cast %19 : vector<16xf32> to vector<16x1xf32>
    %21 = tpu.reciprocal %20 {approx = true} : vector<16x1xf32> -> vector<16x1xf32>
    %22 = vector.broadcast %21 : vector<16x1xf32> to vector<16x16xf32>
    %23 = arith.mulf %18, %22 : vector<16x16xf32>
    %24 = vector.extract_strided_slice %9 {offsets = [0, 0], sizes = [16, 8], strides = [1, 1]} : vector<16x32xf32> to vector<16x8xf32>
    %cst_9 = arith.constant dense<0.000000e+00> : vector<16x8xf32>
    %25 = tpu.matmul %23, %24, %cst_9 {dimension_numbers = #tpu.dot_dimension_numbers<[1], [0], [0], [1], [0, 0, 1, 1], [], []>} : vector<16x16xf32>, vector<16x8xf32>, vector<16x8xf32> -> vector<16x8xf32>
    %26 = vector.extract_strided_slice %7 {offsets = [0, 8], sizes = [16, 8], strides = [1, 1]} : vector<16x32xf32> to vector<16x8xf32>
    %27 = vector.extract_strided_slice %8 {offsets = [0, 8], sizes = [16, 8], strides = [1, 1]} : vector<16x32xf32> to vector<16x8xf32>
    %28 = tpu.transpose %27, [1, 0] : vector<16x8xf32> -> vector<8x16xf32>
    %cst_10 = arith.constant dense<0.000000e+00> : vector<16x16xf32>
    %29 = tpu.matmul %26, %28, %cst_10 {dimension_numbers = #tpu.dot_dimension_numbers<[1], [0], [0], [1], [0, 0, 1, 1], [], []>} : vector<16x8xf32>, vector<8x16xf32>, vector<16x16xf32> -> vector<16x16xf32>
    %cst_11 = arith.constant dense<0xFF800000> : vector<16xf32>
    %30 = vector.multi_reduction <maximumf>, %29, %cst_11 [1] : vector<16x16xf32> to vector<16xf32>
    %31 = vector.shape_cast %30 : vector<16xf32> to vector<16x1xf32>
    %32 = vector.broadcast %31 : vector<16x1xf32> to vector<16x16xf32>
    %33 = arith.subf %29, %32 : vector<16x16xf32>
    %34 = math.exp %33 : vector<16x16xf32>
    %cst_12 = arith.constant dense<0.000000e+00> : vector<16xf32>
    %35 = vector.multi_reduction <add>, %34, %cst_12 [1] : vector<16x16xf32> to vector<16xf32>
    %36 = vector.shape_cast %35 : vector<16xf32> to vector<16x1xf32>
    %37 = tpu.reciprocal %36 {approx = true} : vector<16x1xf32> -> vector<16x1xf32>
    %38 = vector.broadcast %37 : vector<16x1xf32> to vector<16x16xf32>
    %39 = arith.mulf %34, %38 : vector<16x16xf32>
    %40 = vector.extract_strided_slice %9 {offsets = [0, 8], sizes = [16, 8], strides = [1, 1]} : vector<16x32xf32> to vector<16x8xf32>
    %cst_13 = arith.constant dense<0.000000e+00> : vector<16x8xf32>
    %41 = tpu.matmul %39, %40, %cst_13 {dimension_numbers = #tpu.dot_dimension_numbers<[1], [0], [0], [1], [0, 0, 1, 1], [], []>} : vector<16x16xf32>, vector<16x8xf32>, vector<16x8xf32> -> vector<16x8xf32>
    %42 = vector.extract_strided_slice %7 {offsets = [0, 16], sizes = [16, 8], strides = [1, 1]} : vector<16x32xf32> to vector<16x8xf32>
    %43 = vector.extract_strided_slice %8 {offsets = [0, 16], sizes = [16, 8], strides = [1, 1]} : vector<16x32xf32> to vector<16x8xf32>
    %44 = tpu.transpose %43, [1, 0] : vector<16x8xf32> -> vector<8x16xf32>
    %cst_14 = arith.constant dense<0.000000e+00> : vector<16x16xf32>
    %45 = tpu.matmul %42, %44, %cst_14 {dimension_numbers = #tpu.dot_dimension_numbers<[1], [0], [0], [1], [0, 0, 1, 1], [], []>} : vector<16x8xf32>, vector<8x16xf32>, vector<16x16xf32> -> vector<16x16xf32>
    %cst_15 = arith.constant dense<0xFF800000> : vector<16xf32>
    %46 = vector.multi_reduction <maximumf>, %45, %cst_15 [1] : vector<16x16xf32> to vector<16xf32>
    %47 = vector.shape_cast %46 : vector<16xf32> to vector<16x1xf32>
    %48 = vector.broadcast %47 : vector<16x1xf32> to vector<16x16xf32>
    %49 = arith.subf %45, %48 : vector<16x16xf32>
    %50 = math.exp %49 : vector<16x16xf32>
    %cst_16 = arith.constant dense<0.000000e+00> : vector<16xf32>
    %51 = vector.multi_reduction <add>, %50, %cst_16 [1] : vector<16x16xf32> to vector<16xf32>
    %52 = vector.shape_cast %51 : vector<16xf32> to vector<16x1xf32>
    %53 = tpu.reciprocal %52 {approx = true} : vector<16x1xf32> -> vector<16x1xf32>
    %54 = vector.broadcast %53 : vector<16x1xf32> to vector<16x16xf32>
    %55 = arith.mulf %50, %54 : vector<16x16xf32>
    %56 = vector.extract_strided_slice %9 {offsets = [0, 16], sizes = [16, 8], strides = [1, 1]} : vector<16x32xf32> to vector<16x8xf32>
    %cst_17 = arith.constant dense<0.000000e+00> : vector<16x8xf32>
    %57 = tpu.matmul %55, %56, %cst_17 {dimension_numbers = #tpu.dot_dimension_numbers<[1], [0], [0], [1], [0, 0, 1, 1], [], []>} : vector<16x16xf32>, vector<16x8xf32>, vector<16x8xf32> -> vector<16x8xf32>
    %58 = vector.extract_strided_slice %7 {offsets = [0, 24], sizes = [16, 8], strides = [1, 1]} : vector<16x32xf32> to vector<16x8xf32>
    %59 = vector.extract_strided_slice %8 {offsets = [0, 24], sizes = [16, 8], strides = [1, 1]} : vector<16x32xf32> to vector<16x8xf32>
    %60 = tpu.transpose %59, [1, 0] : vector<16x8xf32> -> vector<8x16xf32>
    %cst_18 = arith.constant dense<0.000000e+00> : vector<16x16xf32>
    %61 = tpu.matmul %58, %60, %cst_18 {dimension_numbers = #tpu.dot_dimension_numbers<[1], [0], [0], [1], [0, 0, 1, 1], [], []>} : vector<16x8xf32>, vector<8x16xf32>, vector<16x16xf32> -> vector<16x16xf32>
    %cst_19 = arith.constant dense<0xFF800000> : vector<16xf32>
    %62 = vector.multi_reduction <maximumf>, %61, %cst_19 [1] : vector<16x16xf32> to vector<16xf32>
    %63 = vector.shape_cast %62 : vector<16xf32> to vector<16x1xf32>
    %64 = vector.broadcast %63 : vector<16x1xf32> to vector<16x16xf32>
    %65 = arith.subf %61, %64 : vector<16x16xf32>
    %66 = math.exp %65 : vector<16x16xf32>
    %cst_20 = arith.constant dense<0.000000e+00> : vector<16xf32>
    %67 = vector.multi_reduction <add>, %66, %cst_20 [1] : vector<16x16xf32> to vector<16xf32>
    %68 = vector.shape_cast %67 : vector<16xf32> to vector<16x1xf32>
    %69 = tpu.reciprocal %68 {approx = true} : vector<16x1xf32> -> vector<16x1xf32>
    %70 = vector.broadcast %69 : vector<16x1xf32> to vector<16x16xf32>
    %71 = arith.mulf %66, %70 : vector<16x16xf32>
    %72 = vector.extract_strided_slice %9 {offsets = [0, 24], sizes = [16, 8], strides = [1, 1]} : vector<16x32xf32> to vector<16x8xf32>
    %cst_21 = arith.constant dense<0.000000e+00> : vector<16x8xf32>
    %73 = tpu.matmul %71, %72, %cst_21 {dimension_numbers = #tpu.dot_dimension_numbers<[1], [0], [0], [1], [0, 0, 1, 1], [], []>} : vector<16x16xf32>, vector<16x8xf32>, vector<16x8xf32> -> vector<16x8xf32>
    %74 = tpu.concatenate %25, %41, %57, %73 in 1 : vector<16x8xf32>, vector<16x8xf32>, vector<16x8xf32>, vector<16x8xf32> -> vector<16x32xf32>
    %cst_22 = arith.constant dense<0.000000e+00> : vector<16x32xf32>
    %75 = tpu.matmul %74, %3, %cst_22 {dimension_numbers = #tpu.dot_dimension_numbers<[1], [0], [0], [1], [0, 0, 1, 1], [], []>} : vector<16x32xf32>, vector<32x32xf32>, vector<16x32xf32> -> vector<16x32xf32>
    %76 = arith.addf %1, %75 : vector<16x32xf32>
    %cst_23 = arith.constant dense<0.000000e+00> : vector<16x96xf32>
    %77 = tpu.matmul %76, %2, %cst_23 {dimension_numbers = #tpu.dot_dimension_numbers<[1], [0], [0], [1], [0, 0, 1, 1], [], []>} : vector<16x32xf32>, vector<32x96xf32>, vector<16x96xf32> -> vector<16x96xf32>
    %78 = vector.extract_strided_slice %77 {offsets = [0, 0], sizes = [16, 32], strides = [1, 1]} : vector<16x96xf32> to vector<16x32xf32>
    %cst_24 = arith.constant 0.353553385 : f32
    %79 = vector.broadcast %cst_24 : f32 to vector<16x32xf32>
    %80 = arith.mulf %78, %79 : vector<16x32xf32>
    %81 = vector.extract_strided_slice %77 {offsets = [0, 32], sizes = [16, 32], strides = [1, 1]} : vector<16x96xf32> to vector<16x32xf32>
    %82 = vector.extract_strided_slice %77 {offsets = [0, 64], sizes = [16, 32], strides = [1, 1]} : vector<16x96xf32> to vector<16x32xf32>
    %83 = vector.extract_strided_slice %80 {offsets = [0, 0], sizes = [16, 8], strides = [1, 1]} : vector<16x32xf32> to vector<16x8xf32>
    %84 = vector.extract_strided_slice %81 {offsets = [0, 0], sizes = [16, 8], strides = [1, 1]} : vector<16x32xf32> to vector<16x8xf32>
    %85 = tpu.transpose %84, [1, 0] : vector<16x8xf32> -> vector<8x16xf32>
    %cst_25 = arith.constant dense<0.000000e+00> : vector<16x16xf32>
    %86 = tpu.matmul %83, %85, %cst_25 {dimension_numbers = #tpu.dot_dimension_numbers<[1], [0], [0], [1], [0, 0, 1, 1], [], []>} : vector<16x8xf32>, vector<8x16xf32>, vector<16x16xf32> -> vector<16x16xf32>
    %cst_26 = arith.constant dense<0xFF800000> : vector<16xf32>
    %87 = vector.multi_reduction <maximumf>, %86, %cst_26 [1] : vector<16x16xf32> to vector<16xf32>
    %88 = vector.shape_cast %87 : vector<16xf32> to vector<16x1xf32>
    %89 = vector.broadcast %88 : vector<16x1xf32> to vector<16x16xf32>
    %90 = arith.subf %86, %89 : vector<16x16xf32>
    %91 = math.exp %90 : vector<16x16xf32>
    %cst_27 = arith.constant dense<0.000000e+00> : vector<16xf32>
    %92 = vector.multi_reduction <add>, %91, %cst_27 [1] : vector<16x16xf32> to vector<16xf32>
    %93 = vector.shape_cast %92 : vector<16xf32> to vector<16x1xf32>
    %94 = tpu.reciprocal %93 {approx = true} : vector<16x1xf32> -> vector<16x1xf32>
    %95 = vector.broadcast %94 : vector<16x1xf32> to vector<16x16xf32>
    %96 = arith.mulf %91, %95 : vector<16x16xf32>
    %97 = vector.extract_strided_slice %82 {offsets = [0, 0], sizes = [16, 8], strides = [1, 1]} : vector<16x32xf32> to vector<16x8xf32>
    %cst_28 = arith.constant dense<0.000000e+00> : vector<16x8xf32>
    %98 = tpu.matmul %96, %97, %cst_28 {dimension_numbers = #tpu.dot_dimension_numbers<[1], [0], [0], [1], [0, 0, 1, 1], [], []>} : vector<16x16xf32>, vector<16x8xf32>, vector<16x8xf32> -> vector<16x8xf32>
    %99 = vector.extract_strided_slice %80 {offsets = [0, 8], sizes = [16, 8], strides = [1, 1]} : vector<16x32xf32> to vector<16x8xf32>
    %100 = vector.extract_strided_slice %81 {offsets = [0, 8], sizes = [16, 8], strides = [1, 1]} : vector<16x32xf32> to vector<16x8xf32>
    %101 = tpu.transpose %100, [1, 0] : vector<16x8xf32> -> vector<8x16xf32>
    %cst_29 = arith.constant dense<0.000000e+00> : vector<16x16xf32>
    %102 = tpu.matmul %99, %101, %cst_29 {dimension_numbers = #tpu.dot_dimension_numbers<[1], [0], [0], [1], [0, 0, 1, 1], [], []>} : vector<16x8xf32>, vector<8x16xf32>, vector<16x16xf32> -> vector<16x16xf32>
    %cst_30 = arith.constant dense<0xFF800000> : vector<16xf32>
    %103 = vector.multi_reduction <maximumf>, %102, %cst_30 [1] : vector<16x16xf32> to vector<16xf32>
    %104 = vector.shape_cast %103 : vector<16xf32> to vector<16x1xf32>
    %105 = vector.broadcast %104 : vector<16x1xf32> to vector<16x16xf32>
    %106 = arith.subf %102, %105 : vector<16x16xf32>
    %107 = math.exp %106 : vector<16x16xf32>
    %cst_31 = arith.constant dense<0.000000e+00> : vector<16xf32>
    %108 = vector.multi_reduction <add>, %107, %cst_31 [1] : vector<16x16xf32> to vector<16xf32>
    %109 = vector.shape_cast %108 : vector<16xf32> to vector<16x1xf32>
    %110 = tpu.reciprocal %109 {approx = true} : vector<16x1xf32> -> vector<16x1xf32>
    %111 = vector.broadcast %110 : vector<16x1xf32> to vector<16x16xf32>
    %112 = arith.mulf %107, %111 : vector<16x16xf32>
    %113 = vector.extract_strided_slice %82 {offsets = [0, 8], sizes = [16, 8], strides = [1, 1]} : vector<16x32xf32> to vector<16x8xf32>
    %cst_32 = arith.constant dense<0.000000e+00> : vector<16x8xf32>
    %114 = tpu.matmul %112, %113, %cst_32 {dimension_numbers = #tpu.dot_dimension_numbers<[1], [0], [0], [1], [0, 0, 1, 1], [], []>} : vector<16x16xf32>, vector<16x8xf32>, vector<16x8xf32> -> vector<16x8xf32>
    %115 = vector.extract_strided_slice %80 {offsets = [0, 16], sizes = [16, 8], strides = [1, 1]} : vector<16x32xf32> to vector<16x8xf32>
    %116 = vector.extract_strided_slice %81 {offsets = [0, 16], sizes = [16, 8], strides = [1, 1]} : vector<16x32xf32> to vector<16x8xf32>
    %117 = tpu.transpose %116, [1, 0] : vector<16x8xf32> -> vector<8x16xf32>
    %cst_33 = arith.constant dense<0.000000e+00> : vector<16x16xf32>
    %118 = tpu.matmul %115, %117, %cst_33 {dimension_numbers = #tpu.dot_dimension_numbers<[1], [0], [0], [1], [0, 0, 1, 1], [], []>} : vector<16x8xf32>, vector<8x16xf32>, vector<16x16xf32> -> vector<16x16xf32>
    %cst_34 = arith.constant dense<0xFF800000> : vector<16xf32>
    %119 = vector.multi_reduction <maximumf>, %118, %cst_34 [1] : vector<16x16xf32> to vector<16xf32>
    %120 = vector.shape_cast %119 : vector<16xf32> to vector<16x1xf32>
    %121 = vector.broadcast %120 : vector<16x1xf32> to vector<16x16xf32>
    %122 = arith.subf %118, %121 : vector<16x16xf32>
    %123 = math.exp %122 : vector<16x16xf32>
    %cst_35 = arith.constant dense<0.000000e+00> : vector<16xf32>
    %124 = vector.multi_reduction <add>, %123, %cst_35 [1] : vector<16x16xf32> to vector<16xf32>
    %125 = vector.shape_cast %124 : vector<16xf32> to vector<16x1xf32>
    %126 = tpu.reciprocal %125 {approx = true} : vector<16x1xf32> -> vector<16x1xf32>
    %127 = vector.broadcast %126 : vector<16x1xf32> to vector<16x16xf32>
    %128 = arith.mulf %123, %127 : vector<16x16xf32>
    %129 = vector.extract_strided_slice %82 {offsets = [0, 16], sizes = [16, 8], strides = [1, 1]} : vector<16x32xf32> to vector<16x8xf32>
    %cst_36 = arith.constant dense<0.000000e+00> : vector<16x8xf32>
    %130 = tpu.matmul %128, %129, %cst_36 {dimension_numbers = #tpu.dot_dimension_numbers<[1], [0], [0], [1], [0, 0, 1, 1], [], []>} : vector<16x16xf32>, vector<16x8xf32>, vector<16x8xf32> -> vector<16x8xf32>
    %131 = vector.extract_strided_slice %80 {offsets = [0, 24], sizes = [16, 8], strides = [1, 1]} : vector<16x32xf32> to vector<16x8xf32>
    %132 = vector.extract_strided_slice %81 {offsets = [0, 24], sizes = [16, 8], strides = [1, 1]} : vector<16x32xf32> to vector<16x8xf32>
    %133 = tpu.transpose %132, [1, 0] : vector<16x8xf32> -> vector<8x16xf32>
    %cst_37 = arith.constant dense<0.000000e+00> : vector<16x16xf32>
    %134 = tpu.matmul %131, %133, %cst_37 {dimension_numbers = #tpu.dot_dimension_numbers<[1], [0], [0], [1], [0, 0, 1, 1], [], []>} : vector<16x8xf32>, vector<8x16xf32>, vector<16x16xf32> -> vector<16x16xf32>
    %cst_38 = arith.constant dense<0xFF800000> : vector<16xf32>
    %135 = vector.multi_reduction <maximumf>, %134, %cst_38 [1] : vector<16x16xf32> to vector<16xf32>
    %136 = vector.shape_cast %135 : vector<16xf32> to vector<16x1xf32>
    %137 = vector.broadcast %136 : vector<16x1xf32> to vector<16x16xf32>
    %138 = arith.subf %134, %137 : vector<16x16xf32>
    %139 = math.exp %138 : vector<16x16xf32>
    %cst_39 = arith.constant dense<0.000000e+00> : vector<16xf32>
    %140 = vector.multi_reduction <add>, %139, %cst_39 [1] : vector<16x16xf32> to vector<16xf32>
    %141 = vector.shape_cast %140 : vector<16xf32> to vector<16x1xf32>
    %142 = tpu.reciprocal %141 {approx = true} : vector<16x1xf32> -> vector<16x1xf32>
    %143 = vector.broadcast %142 : vector<16x1xf32> to vector<16x16xf32>
    %144 = arith.mulf %139, %143 : vector<16x16xf32>
    %145 = vector.extract_strided_slice %82 {offsets = [0, 24], sizes = [16, 8], strides = [1, 1]} : vector<16x32xf32> to vector<16x8xf32>
    %cst_40 = arith.constant dense<0.000000e+00> : vector<16x8xf32>
    %146 = tpu.matmul %144, %145, %cst_40 {dimension_numbers = #tpu.dot_dimension_numbers<[1], [0], [0], [1], [0, 0, 1, 1], [], []>} : vector<16x16xf32>, vector<16x8xf32>, vector<16x8xf32> -> vector<16x8xf32>
    %147 = tpu.concatenate %98, %114, %130, %146 in 1 : vector<16x8xf32>, vector<16x8xf32>, vector<16x8xf32>, vector<16x8xf32> -> vector<16x32xf32>
    %cst_41 = arith.constant dense<0.000000e+00> : vector<16x32xf32>
    %148 = tpu.matmul %147, %3, %cst_41 {dimension_numbers = #tpu.dot_dimension_numbers<[1], [0], [0], [1], [0, 0, 1, 1], [], []>} : vector<16x32xf32>, vector<32x32xf32>, vector<16x32xf32> -> vector<16x32xf32>
    %149 = arith.addf %76, %148 : vector<16x32xf32>
    %c192 = arith.constant 192 : index
    %c0_42 = arith.constant 0 : index
    %150 = vector.load %arg2[%c192, %c0_42] : memref<200x128xf32, #tpu.memory_space<vmem>>, vector<1x32xf32>
    %151 = vector.shape_cast %150 : vector<1x32xf32> to vector<32xf32>
    %c193 = arith.constant 193 : index
    %c0_43 = arith.constant 0 : index
    %152 = vector.load %arg2[%c193, %c0_43] : memref<200x128xf32, #tpu.memory_space<vmem>>, vector<1x32xf32>
    %153 = vector.shape_cast %152 : vector<1x32xf32> to vector<32xf32>
    %c194 = arith.constant 194 : index
    %c0_44 = arith.constant 0 : index
    %154 = vector.load %arg2[%c194, %c0_44] : memref<200x128xf32, #tpu.memory_space<vmem>>, vector<1x32xf32>
    %155 = vector.shape_cast %154 : vector<1x32xf32> to vector<32xf32>
    %c195 = arith.constant 195 : index
    %c0_45 = arith.constant 0 : index
    %156 = vector.load %arg2[%c195, %c0_45] : memref<200x128xf32, #tpu.memory_space<vmem>>, vector<1x32xf32>
    %157 = vector.shape_cast %156 : vector<1x32xf32> to vector<32xf32>
    %c196 = arith.constant 196 : index
    %c0_46 = arith.constant 0 : index
    %158 = vector.load %arg2[%c196, %c0_46] : memref<200x128xf32, #tpu.memory_space<vmem>>, vector<1x128xf32>
    %159 = vector.shape_cast %158 : vector<1x128xf32> to vector<128xf32>
    %c64 = arith.constant 64 : index
    %c0_47 = arith.constant 0 : index
    %160 = vector.load %arg2[%c64, %c0_47] : memref<200x128xf32, #tpu.memory_space<vmem>>, vector<32x32xf32>
    %cst_48 = arith.constant dense<0.000000e+00> : vector<16x32xf32>
    %161 = tpu.matmul %149, %160, %cst_48 {dimension_numbers = #tpu.dot_dimension_numbers<[1], [0], [0], [1], [0, 0, 1, 1], [], []>} : vector<16x32xf32>, vector<32x32xf32>, vector<16x32xf32> -> vector<16x32xf32>
    %162 = vector.shape_cast %151 : vector<32xf32> to vector<1x32xf32>
    %163 = vector.broadcast %162 : vector<1x32xf32> to vector<16x32xf32>
    %164 = arith.addf %161, %163 : vector<16x32xf32>
    %c96 = arith.constant 96 : index
    %c0_49 = arith.constant 0 : index
    %165 = vector.load %arg2[%c96, %c0_49] : memref<200x128xf32, #tpu.memory_space<vmem>>, vector<32x32xf32>
    %cst_50 = arith.constant dense<0.000000e+00> : vector<16x32xf32>
    %166 = tpu.matmul %164, %165, %cst_50 {dimension_numbers = #tpu.dot_dimension_numbers<[1], [0], [0], [1], [0, 0, 1, 1], [], []>} : vector<16x32xf32>, vector<32x32xf32>, vector<16x32xf32> -> vector<16x32xf32>
    %167 = vector.shape_cast %153 : vector<32xf32> to vector<1x32xf32>
    %168 = vector.broadcast %167 : vector<1x32xf32> to vector<16x32xf32>
    %169 = arith.addf %166, %168 : vector<16x32xf32>
    %cst_51 = arith.constant 0.000000e+00 : f32
    %170 = vector.broadcast %cst_51 : f32 to vector<16x32xf32>
    %171 = arith.maximumf %169, %170 : vector<16x32xf32>
    %cst_52 = arith.constant dense<0.000000e+00> : vector<16xf32>
    %172 = vector.multi_reduction <add>, %171, %cst_52 [1] : vector<16x32xf32> to vector<16xf32>
    %173 = vector.shape_cast %172 : vector<16xf32> to vector<16x1xf32>
    %cst_53 = arith.constant 3.200000e+01 : f32
    %174 = vector.broadcast %cst_53 : f32 to vector<16x1xf32>
    %175 = arith.divf %173, %174 : vector<16x1xf32>
    %176 = vector.broadcast %175 : vector<16x1xf32> to vector<16x32xf32>
    %177 = arith.subf %171, %176 : vector<16x32xf32>
    %178 = vector.broadcast %175 : vector<16x1xf32> to vector<16x32xf32>
    %179 = arith.subf %171, %178 : vector<16x32xf32>
    %180 = arith.mulf %177, %179 : vector<16x32xf32>
    %cst_54 = arith.constant dense<0.000000e+00> : vector<16xf32>
    %181 = vector.multi_reduction <add>, %180, %cst_54 [1] : vector<16x32xf32> to vector<16xf32>
    %182 = vector.shape_cast %181 : vector<16xf32> to vector<16x1xf32>
    %cst_55 = arith.constant 3.200000e+01 : f32
    %183 = vector.broadcast %cst_55 : f32 to vector<16x1xf32>
    %184 = arith.divf %182, %183 : vector<16x1xf32>
    %185 = vector.broadcast %175 : vector<16x1xf32> to vector<16x32xf32>
    %186 = arith.subf %171, %185 : vector<16x32xf32>
    %cst_56 = arith.constant 9.99999974E-6 : f32
    %187 = vector.broadcast %cst_56 : f32 to vector<16x1xf32>
    %188 = arith.addf %184, %187 : vector<16x1xf32>
    %189 = math.rsqrt %188 : vector<16x1xf32>
    %190 = vector.broadcast %189 : vector<16x1xf32> to vector<16x32xf32>
    %191 = arith.mulf %186, %190 : vector<16x32xf32>
    %192 = vector.shape_cast %155 : vector<32xf32> to vector<1x32xf32>
    %193 = vector.broadcast %192 : vector<1x32xf32> to vector<16x32xf32>
    %194 = arith.mulf %191, %193 : vector<16x32xf32>
    %195 = vector.shape_cast %157 : vector<32xf32> to vector<1x32xf32>
    %196 = vector.broadcast %195 : vector<1x32xf32> to vector<16x32xf32>
    %197 = arith.addf %194, %196 : vector<16x32xf32>
    %cst_57 = arith.constant dense<0.000000e+00> : vector<16x32xf32>
    %198 = tpu.matmul %197, %165, %cst_57 {dimension_numbers = #tpu.dot_dimension_numbers<[1], [0], [0], [1], [0, 0, 1, 1], [], []>} : vector<16x32xf32>, vector<32x32xf32>, vector<16x32xf32> -> vector<16x32xf32>
    %199 = vector.shape_cast %153 : vector<32xf32> to vector<1x32xf32>
    %200 = vector.broadcast %199 : vector<1x32xf32> to vector<16x32xf32>
    %201 = arith.addf %198, %200 : vector<16x32xf32>
    %cst_58 = arith.constant 0.000000e+00 : f32
    %202 = vector.broadcast %cst_58 : f32 to vector<16x32xf32>
    %203 = arith.maximumf %201, %202 : vector<16x32xf32>
    %cst_59 = arith.constant dense<0.000000e+00> : vector<16xf32>
    %204 = vector.multi_reduction <add>, %203, %cst_59 [1] : vector<16x32xf32> to vector<16xf32>
    %205 = vector.shape_cast %204 : vector<16xf32> to vector<16x1xf32>
    %cst_60 = arith.constant 3.200000e+01 : f32
    %206 = vector.broadcast %cst_60 : f32 to vector<16x1xf32>
    %207 = arith.divf %205, %206 : vector<16x1xf32>
    %208 = vector.broadcast %207 : vector<16x1xf32> to vector<16x32xf32>
    %209 = arith.subf %203, %208 : vector<16x32xf32>
    %210 = vector.broadcast %207 : vector<16x1xf32> to vector<16x32xf32>
    %211 = arith.subf %203, %210 : vector<16x32xf32>
    %212 = arith.mulf %209, %211 : vector<16x32xf32>
    %cst_61 = arith.constant dense<0.000000e+00> : vector<16xf32>
    %213 = vector.multi_reduction <add>, %212, %cst_61 [1] : vector<16x32xf32> to vector<16xf32>
    %214 = vector.shape_cast %213 : vector<16xf32> to vector<16x1xf32>
    %cst_62 = arith.constant 3.200000e+01 : f32
    %215 = vector.broadcast %cst_62 : f32 to vector<16x1xf32>
    %216 = arith.divf %214, %215 : vector<16x1xf32>
    %217 = vector.broadcast %207 : vector<16x1xf32> to vector<16x32xf32>
    %218 = arith.subf %203, %217 : vector<16x32xf32>
    %cst_63 = arith.constant 9.99999974E-6 : f32
    %219 = vector.broadcast %cst_63 : f32 to vector<16x1xf32>
    %220 = arith.addf %216, %219 : vector<16x1xf32>
    %221 = math.rsqrt %220 : vector<16x1xf32>
    %222 = vector.broadcast %221 : vector<16x1xf32> to vector<16x32xf32>
    %223 = arith.mulf %218, %222 : vector<16x32xf32>
    %224 = vector.shape_cast %155 : vector<32xf32> to vector<1x32xf32>
    %225 = vector.broadcast %224 : vector<1x32xf32> to vector<16x32xf32>
    %226 = arith.mulf %223, %225 : vector<16x32xf32>
    %227 = vector.shape_cast %157 : vector<32xf32> to vector<1x32xf32>
    %228 = vector.broadcast %227 : vector<1x32xf32> to vector<16x32xf32>
    %229 = arith.addf %226, %228 : vector<16x32xf32>
    %c160 = arith.constant 160 : index
    %c0_64 = arith.constant 0 : index
    %230 = vector.load %arg2[%c160, %c0_64] : memref<200x128xf32, #tpu.memory_space<vmem>>, vector<32x16xf32>
    %cst_65 = arith.constant dense<0.000000e+00> : vector<32x32xf32>
    %231 = tpu.matmul %230, %229, %cst_65 {dimension_numbers = #tpu.dot_dimension_numbers<[1], [0], [0], [1], [0, 0, 1, 1], [], []>} : vector<32x16xf32>, vector<16x32xf32>, vector<32x32xf32> -> vector<32x32xf32>
    %c128 = arith.constant 128 : index
    %c0_66 = arith.constant 0 : index
    %232 = vector.load %arg2[%c128, %c0_66] : memref<200x128xf32, #tpu.memory_space<vmem>>, vector<32x128xf32>
    %cst_67 = arith.constant dense<0.000000e+00> : vector<32x128xf32>
    %233 = tpu.matmul %231, %232, %cst_67 {dimension_numbers = #tpu.dot_dimension_numbers<[1], [0], [0], [1], [0, 0, 1, 1], [], []>} : vector<32x32xf32>, vector<32x128xf32>, vector<32x128xf32> -> vector<32x128xf32>
    %234 = vector.shape_cast %159 : vector<128xf32> to vector<1x128xf32>
    %235 = vector.broadcast %234 : vector<1x128xf32> to vector<32x128xf32>
    %236 = arith.addf %233, %235 : vector<32x128xf32>
    %237 = tpu.iota {dimensions = array<i32: 1>} : vector<32x128xi32>
    %c0_i32 = arith.constant 0 : i32
    %238 = vector.broadcast %c0_i32 : i32 to vector<32x128xi32>
    %239 = arith.cmpi eq, %237, %238 : vector<32x128xi32>
    %240 = arith.negf %236 : vector<32x128xf32>
    %241 = math.exp %240 : vector<32x128xf32>
    %cst_68 = arith.constant 1.000000e+00 : f32
    %242 = vector.broadcast %cst_68 : f32 to vector<32x128xf32>
    %243 = arith.addf %242, %241 : vector<32x128xf32>
    %244 = arith.divf %242, %243 : vector<32x128xf32>
    %245 = arith.select %239, %244, %236 : vector<32x128xi1>, vector<32x128xf32>
    %c0_69 = arith.constant 0 : index
    %c0_70 = arith.constant 0 : index
    %c0_71 = arith.constant 0 : index
    %246 = vector.load %arg3[%c0_69, %c0_70, %c0_71] : memref<1x32x128xf32, #tpu.memory_space<vmem>>, vector<1x32x128xf32>
    %247 = vector.shape_cast %246 : vector<1x32x128xf32> to vector<32x128xf32>
    %248 = vector.shape_cast %245 : vector<32x128xf32> to vector<1x32x128xf32>
    tpu.vector_store %arg3[%c0_69, %c0_70, %c0_71], %248 {strides = array<i32>} : memref<1x32x128xf32, #tpu.memory_space<vmem>>, vector<1x32x128xf32>,
    return
  }
  func.func @transform_0(%arg0: i32) -> (i32, i32, i32) {
    %c0_i32 = arith.constant 0 : i32
    %c0_i32_0 = arith.constant 0 : i32
    %c0_i32_1 = arith.constant 0 : i32
    return %arg0, %c0_i32, %c0_i32_0 : i32, i32, i32
  }
  func.func @transform_1(%arg0: i32) -> (i32, i32) {
    %c0_i32 = arith.constant 0 : i32
    %c0_i32_0 = arith.constant 0 : i32
    %c0_i32_1 = arith.constant 0 : i32
    return %c0_i32, %c0_i32_0 : i32, i32
  }
  func.func @transform_2(%arg0: i32) -> (i32, i32, i32) {
    %c0_i32 = arith.constant 0 : i32
    %c0_i32_0 = arith.constant 0 : i32
    %c0_i32_1 = arith.constant 0 : i32
    return %arg0, %c0_i32, %c0_i32_0 : i32, i32, i32
  }
}

</mosaic_0001>

<bundles_post_ra>
// kernel: dsnet_forward.1
= control target key start
LH: loop header
LB: loop body
LE: loop exit
PB: predicated region body
PF: predicated region fallthrough
CT: control target
= control target key end

     0   :  { %7 = vsyncpa [#allocation3], 0  ;;  %s4221_s0 = inlined_call_operand.hbm [shape: f32[2,16,32], index: 0, kind: input, shape index: {}]   ;;  %s4222_s1 = inlined_call_operand.hbm [shape: f32[200,128], index: 1, kind: input, shape index: {}]   ;;  %s4223_s2 = inlined_call_operand.vmem [shape: f32[2,32,128], index: 2, kind: output, shape index: {}]  }
   0x1   :  { %9 = vsyncpa [#allocation3 + $0x1], 0 }
   0x2   :  { %10 = vsyncpa [#allocation5], 0  ;;  %s3781_s9 = smov 0   ;;  %s3783_s10 = smov 0  }
   0x3   :  { %s3785_s11 = smov 0   ;;  %s3787_s12 = smov 0  }
   0x4 LB: > { %s3800_s13 = sadd.s32 4294967295, %s3746_s12   ;;  %p36_p0 = scmp.ne.s32.totalorder %s3738_s10, %s3734_s9  ;;  %s3746_s12 = sphi %s3787_s12, %s4240_s12   ;;  %s3742_s11 = sphi %s3785_s11, %s4239_s11   ;;  %s3738_s10 = sphi %s3783_s10, %s4238_s10   ;;  %s3734_s9 = sphi %s3781_s9, %s4237_s9  }
   0x5   : > { %p4224_p1 = scmp.eq.s32.totalorder %s3800_s13, 0  ;;  %p2841_p2 = scmp.ge.s32.totalorder %s3746_s12, 1 }
   0x6   : > { %p94_p3 = scmp.lt.s32.totalorder %s3746_s12, 3  ;;  %s3748_s16 = smov [#allocation4]  }
   0x7   : > { %p3808_p4 = por %p4224_p1, %p36_p0  ;;  %s106_s17 = sshll.u32 %s3748_s16, 4  ;;  %s107_s17 = int_to_ptr.vmem [resolvable:$true] %s106_s17 }
   0x8   : > { %p3812_p5 = pnand %p2841_p2, %p94_p3  ;;  %s3825_s19 = sadd.s32 1, %s3746_s12  }
   0x9   : > { %s4227_s14 = scalar_select %p3808_p4, 1, 0 }
   0xa   : > { %s4228_s15 = scalar_select %p3812_p5, 1, 0 }
   0xb   : > { %p3422_p6 = pneg %p3812_p5  ;;  %s23_s20 = sadd.s32 1, %s3742_s11 }
   0xc   : > { %s20_s21 = ssub.s32 %s3746_s12, %s3825_s19  ;;  %s3650_s24 = scalar_lea.hbm %s4222_s1, 3200 }
   0xd   : > { %p3820_p7 = pnand %p3422_p6, %p4224_p1  ;;  %p3651_p8 = scmp.ne.s32.totalorder %s4222_s1, %s3650_s24 }
   0xe   : > { %p3657_p12 = scmp.lt.u32.totalorder %s3650_s24, %s4222_s1 }
   0xf   : > { %p3652_p9 = pneg %p3820_p7 }
  0x11   : > { %p3653_p10 = pnand %p3652_p9, %p3651_p8 }
  0x13   : > { %p3654_p11 = pneg %p3653_p10 }
  0x15   : > { %p3659_p13 = pnand %p3657_p12, %p3654_p11 }
  0x17   : > { %3662 = shalt.err (!%p3659_p13)
}
  0x18   : > { %s3663_s29 = scalar_lea.vmem %s107_s17, 3200  ;;  %p3671_p6 = scmp.lt.s32.totalorder %s107_s17, %s107_s17 }
  0x19   : > { %p3664_p0 = scmp.ne.s32.totalorder %s107_s17, %s3663_s29  ;;  %p3672_p1 = scmp.lt.s32.totalorder %s3663_s29, %s3663_s29 }
  0x1b   : > { %p3666_p2 = pnand %p3664_p0, %p3652_p9  ;;  %p3673_p4 = por %p3672_p1, %p3671_p6 }
  0x1d   : > { %p3667_p3 = pneg %p3666_p2 }
  0x1f   : > { %p3674_p5 = pnand %p3673_p4, %p3667_p3 }
  0x21   : > { %3677 = shalt.err (!%p3674_p5)
}
  0x22   : > { %s3749_s30 = smov 128   ;;  %s3750_s3 = smov 8  }
  0x23   : > { %3425 = dma.hbm_to_vmem [thread:$0]  (!%p3820_p7), %s4222_s1, 3200, %s107_s17, [#allocation5], %s3749_s30, %s3749_s30, %s3750_s3  }
  0x24   : > { %p21_p1 = scmp.eq.s32.totalorder %s20_s21, 0  ;;  %p30_p4 = scmp.ne.s32.totalorder %s3742_s11, %s3738_s10 }
  0x25   : > { %p31_p5 = scmp.eq.s32.totalorder %s3746_s12, 0  ;;  %p3431_p8 = scmp.lt.s32.totalorder %s3746_s12, 2 }
  0x26   : > { %s3854_s6 = scalar_select %p21_p1, %s3742_s11, %s23_s20  }
  0x27   : > { %p32_p9 = por %p31_p5, %p30_p4  ;;  %s120_s7 = sand.u32 1, %s3742_s11  }
  0x28   : > { %s2844_s8 = sshll.u32 %s120_s7, 4  ;;  %s2933_s9 = sshll.u32 %s3746_s12, 8 }
  0x29   : > { %s3861_s18 = scalar_lea.hbm %s4221_s0, %s2933_s9  ;;  %s124_s17 = scalar_lea.vmem [#allocation2], %s2844_s8 }
  0x2a   : > { %s131_s21 = sshll.u32 %s124_s17, 4  ;;  %p3865_p7 = pnand %p3431_p8, %p32_p9  ;;  %s3863_s21 = int_to_ptr.vmem [resolvable:$true] %s131_s21 }
  0x2b   : > { %s3869_s12 = scalar_lea.sflag [#allocation3], %s120_s7  ;;  %s3678_s23 = scalar_lea.hbm %s3861_s18, 256 }
  0x2c   : > { %p3679_p10 = scmp.ne.s32.totalorder %s3861_s18, %s3678_s23  ;;  %p3680_p11 = pneg %p3865_p7 }
  0x2d   : > { %s3683_s26 = scalar_lea.hbm %s4221_s0, 512  ;;  %p3684_p0 = scmp.lt.u32.totalorder %s3861_s18, %s4221_s0 }
  0x2e   : > { %p3681_p12 = pnand %p3680_p11, %p3679_p10  ;;  %p3685_p2 = scmp.lt.u32.totalorder %s3683_s26, %s3678_s23 }
  0x2f   : > { %p3687_p6 = scmp.lt.u32.totalorder %s3678_s23, %s3861_s18 }
  0x30   : > { %p3682_p13 = pneg %p3681_p12  ;;  %p3686_p3 = por %p3685_p2, %p3684_p0 }
  0x32   : > { %p3688_p1 = por %p3687_p6, %p3686_p3 }
  0x34   : > { %p3689_p4 = pnand %p3688_p1, %p3682_p13 }
  0x36   : > { %3692 = shalt.err (!%p3689_p4)
}
  0x37   : > { %s3693_s29 = scalar_lea.vmem %s3863_s21, 256  ;;  %s3751_s4 = smov [#allocation2]  }
  0x38   : > { %p3694_p5 = scmp.ne.s32.totalorder %s3863_s21, %s3693_s29  ;;  %s3698_s5 = sshll.u32 %s3751_s4, 4  ;;  %s3699_s5 = int_to_ptr.vmem [resolvable:$false] %s3698_s5 }
  0x39   : > { %s3700_s7 = scalar_lea.vmem %s3699_s5, 512  ;;  %p3701_p10 = scmp.lt.s32.totalorder %s3863_s21, %s3699_s5 }
  0x3a   : > { %p3696_p8 = pnand %p3694_p5, %p3680_p11  ;;  %p3702_p12 = scmp.lt.s32.totalorder %s3700_s7, %s3693_s29 }
  0x3c   : > { %p3697_p9 = pneg %p3696_p8  ;;  %p3703_p0 = por %p3702_p12, %p3701_p10 }
  0x3e   : > { %p3704_p2 = pnand %p3703_p0, %p3697_p9 }
  0x40   : > { %3707 = shalt.err (!%p3704_p2)
}
  0x41   : > { %3429 = dma.hbm_to_vmem [thread:$0]  (!%p3865_p7), %s3861_s18, 256, %s3863_s21, %s3869_s12, %s3749_s30, %s3749_s30, %s3750_s3  }
  0x42   : > { %p4231_p11 = scmp.ne.s32.totalorder %s4228_s15, 0 }
  0x43   : > { %s145_s8 = sand.u32 (!%p4231_p11), 1, %s3738_s10   ;;  %p4232_p13 = scmp.ne.s32.totalorder (!%p4231_p11), %s4227_s14, 0 }
  0x44   : > { %143 = sbr.rel (%p4231_p11) target bundleno = 7414 (0x1cf6), region = 28  ;;  %s2848_s9 = sshll.u32 (!%p4231_p11), %s145_s8, 4 }
  0x45   : > { %s146_s16 = scalar_lea.sflag (!%p4231_p11), [#allocation3], %s145_s8  ;;  %s149_s22 = scalar_lea.vmem (!%p4231_p11), [#allocation2], %s2848_s9 }
  0x4b   : > { %3725 = dma.done.wait (%p4232_p13), %s146_s16, 256  }
  0x4c   : > { %3727 = vsyncadd (%p4232_p13), %s146_s16, 4294967040  ;;  %p4233_p3 = scmp.eq.s32.totalorder %s3800_s13, 0 }
  0x4e   : > { %3729 = dma.done.wait (%p4233_p3), [#allocation5], 3200   ;;  %p4234_p6 = pmov %p4233_p3 }
  0x4f   : > { %vm189_vm0 = vcmask 261120   ;;  %v181_v0 = vld [vmem:[#allocation4] sm:$0xff]  ;;  %v182_v1 = vld [vmem:[#allocation4 + $0x8] sm:$0xff]  ;;  %v183_v2 = vld [vmem:[#allocation4 + $0x10] sm:$0xff]  ;;  %vm279_vm1 = vcmask 64512   ;;  %s3752_s14 = smov 96  }
  0x50   : > { %3731 = vsyncadd (%p4234_p6), [#allocation5], 4294964096  ;;  %v3911_v3 = vpack.c.bf16 %v182_v1, %v181_v0  ;;  %v184_v4 = vld [vmem:[#allocation4 + $0x18] sm:$0xff]  ;;  %v3913_v5 = vld [vmem:[%s149_s22] sm:$0xff]  ;;  %s3753_s15 = smov 120   ;;  %s3754_s30 = smov 88  }
  0x51   : > { %v3915_v6 = vpack.c.bf16 %v184_v4, %v183_v2  ;;  %3063 = vmatprep.mubr.msk.f32.mxu0 %vm189_vm0, %v3913_v5  ;;  %v3923_v7 = vld [vmem:[%s149_s22 + $0x8] sm:$0xff]  ;;  %vm3945_vm2 = vmpackc.low %vm279_vm1, %vm279_vm1  ;;  %vm365_vm3 = vcmask 130048   ;;  %s3755_s3 = smov 64   ;;  %s3756_s18 = smov 80   ;;  %vm1103_vm4 = vcmask 195584  }
  0x52   : > { %3269 = vmatprep.subr.bf16.mxu0 %v3911_v3  ;;  %s3757_s17 = smov 56   ;;  %s3758_s21 = smov 112  }
  0x53   : > { %3271 = vmatpush3.bf16.msra.mxu0 %v3911_v3  ;;  %s3759_s20 = smov 72   ;;  %s3760_s12 = smov 104  }
  0x54   : > { %3273 = vmatprep.subr.bf16.mxu0 %v3915_v6  ;;  %s3761_s23 = smov 48   ;;  %s3762_s24 = smov 8  }
  0x55   : > { %s3763_s25 = smov 40   ;;  %s3764_s26 = smov 16  }
  0x56   : > { %s3765_s27 = smov 24   ;;  %p174_p7 = scmp.lt.s32.totalorder %s3800_s13, 1 }
  0x57   : > { %3275 = vmatpush3.bf16.msra.mxu0 %v3915_v6 }
  0x58   : > { %s4242_s13 = smov (!%p174_p7, %s3800_s13), 1 }
  0x59   : > { %s2934_s28 = sshll.u32 %s4242_s13, 5 }
  0x5a   : > { %3064 = vmatmul.mubr.msk.f32.vlgmr.msra.gmra.mrb[0].mxu0 %vm189_vm0, %v3923_v7  ;;  %s178_s5 = scalar_lea.vmem %s4223_s2, %s2934_s28 }
 0x12d   : > { %v3065_v8 = vpop.f32.mrb[0].mxu0 }
 0x12e   : > { %v262_v9 = vpop.f32.mrb[1].mxu0  ;;  %v3937_v12 = vmul.f32 0.35355338, %v3065_v8 }
 0x12f   : > { %v3927_v10 = vpack.i.bf16 %v3065_v8, %v262_v9  ;;  %v3929_v11 = vmul.f32 0.35355338, %v262_v9 }
 0x131   : > { %3483 = vrot.lane.b32.xlu0 %v3927_v10, %s3752_s14  ;;  %475 = vrot.lane.b32.xlu1 %v3929_v11, %s3753_s15 }
 0x132   : > { %3070 = vmatprep.mubr.msk.f32.mxu1 %vm279_vm1, %v3929_v11 }
 0x135   : > { %3488 = vrot.lane.b32.xlu0 %v3927_v10, %s3754_s30  ;;  %477 = vrot.lane.b32.xlu1 %v3937_v12, %s3753_s15 }
 0x1a3   : > { %v3484_v13 = vpop.permute.xlu0 %3483  ;;  %v476_v22 = vpop.permute.xlu1 %475 }
 0x1a4   : > { %v3486_v14 = vunpack.i.h.bf16 %v3484_v13  ;;  %v3485_v15 = vunpack.i.l.bf16 %v3484_v13 }
 0x1a6   : > { %v3276_v17 = vpack.c.bf16 %v3486_v14, %v3485_v15 }
 0x1a7   : > { %v3489_v18 = vpop.permute.xlu0 %3488  ;;  %v478_v23 = vpop.permute.xlu1 %477 }
 0x1a8   : > { %v3491_v19 = vunpack.i.h.bf16 %v3489_v18  ;;  %v3490_v20 = vunpack.i.l.bf16 %v3489_v18  ;;  %3278 = vmatprep.subr.msk.bf16.mxu1 %vm3945_vm2, %v3276_v17 }
 0x1a9   : > { %3281 = vmatpush3.bf16.xpose.msk.msra.mxu1 %vm3945_vm2, %v3276_v17 }
 0x1aa   : > { %v3286_v21 = vpack.c.bf16 %v3491_v19, %v3490_v20 }
 0x1ac   : > { %3288 = vmatprep.subr.msk.bf16.mxu1 %vm3945_vm2, %v3286_v21 }
 0x1b0   : > { %3071 = vmatmul.mubr.msk.f32.vlgmr.msra.gmra.mrb[0].mxu1 %vm279_vm1, %v3937_v12 }
 0x1b1   : > { %3291 = vmatpush3.bf16.xpose.msk.msra.mxu1 %vm3945_vm2, %v3286_v21  ;;  %3084 = vmatprep.mubr.msk.f32.mxu1 %vm279_vm1, %v476_v22 }
 0x1b8   : > { %3085 = vmatmul.mubr.msk.f32.vlgmr.msra.gmra.mrb[2].mxu1 %vm279_vm1, %v478_v23 }
 0x283   : > { %v3072_v24 = vpop.f32.mrb[0].mxu1 }
 0x284   : > { %v356_v25 = vpop.f32.mrb[1].mxu1  ;;  %v369_v26 = vsel %vm365_vm3, %v3072_v24, -inf }
 0x285   : > { %370 = vmax.xlane.f32.xlu1 %v369_v26  ;;  %v366_v27 = vsel %vm365_vm3, %v356_v25, -inf }
 0x286   : > { %367 = vmax.xlane.f32.xlu0 %v366_v27 }
 0x28b   : > { %v3086_v28 = vpop.f32.mrb[2].mxu1 }
 0x28c   : > { %v557_v29 = vpop.f32.mrb[3].mxu1  ;;  %v569_v31 = vsel %vm365_vm3, %v3086_v28, -inf }
 0x28d   : > { %v566_v30 = vsel %vm365_vm3, %v557_v29, -inf }
 0x28e   : > { %567 = vmax.xlane.f32.xlu0 %v566_v30 }
 0x292   : > { %570 = vmax.xlane.f32.xlu0 %v569_v31 }
 0x296   : > { %3493 = vrot.lane.b32.xlu1 %v3927_v10, %s3755_s3 }
 0x312   : > { %v371_v32 = vpop.xlane.xlu1 %370 }
 0x313   : > { %v373_v33 = vsub.f32 %v3072_v24, %v371_v32  ;;  %v368_v34 = vpop.xlane.xlu0 %367 }
 0x314   : > { %v372_v35 = vsub.f32 %v356_v25, %v368_v34 }
 0x315   : > { %v376_v36 = vmul.f32 1.442695, %v373_v33 }
 0x316   : > { %v374_v37 = vmul.f32 1.442695, %v372_v35  ;;  %v3494_v38 = vpop.permute.xlu1 %3493 }
 0x317   : > { %3562 = vpow2.f32 %v376_v36  ;;  %v3496_v39 = vunpack.i.h.bf16 %v3494_v38  ;;  %v3495_v40 = vunpack.i.l.bf16 %v3494_v38 }
 0x318   : > { %3564 = vpow2.f32 %v374_v37 }
 0x319   : > { %v3282_v41 = vpack.c.bf16 %v3496_v39, %v3495_v40 }
 0x31b   : > { %3283 = vmatprep.subr.bf16.mxu0 %v3282_v41  ;;  %v568_v42 = vpop.xlane.xlu0 %567 }
 0x31c   : > { %3285 = vmatpush3.bf16.msra.mxu0 %v3282_v41  ;;  %v572_v52 = vsub.f32 %v557_v29, %v568_v42 }
 0x31e   : > { %v574_v53 = vmul.f32 1.442695, %v572_v52 }
 0x31f   : > { %v571_v43 = vpop.xlane.xlu0 %570 }
 0x320   : > { %v573_v44 = vsub.f32 %v3086_v28, %v571_v43 }
 0x321   : > { %v3563_v45 = vpop.eup %3562 }
 0x322   : > { %v3565_v46 = vpop.eup %3564  ;;  %v576_v47 = vmul.f32 1.442695, %v573_v44  ;;  %v381_v48 = vsel %vm365_vm3, %v3563_v45, 0.0 }
 0x323   : > { %382 = vadd.xlane.f32.xlu0 %v381_v48  ;;  %v378_v49 = vsel %vm365_vm3, %v3565_v46, 0.0 }
 0x324   : > { %3566 = vpow2.f32 %v576_v47  ;;  %379 = vadd.xlane.f32.xlu1 %v378_v49 }
 0x325   : > { %3568 = vpow2.f32 %v574_v53 }
 0x32e   : > { %v3567_v50 = vpop.eup %3566 }
 0x32f   : > { %v581_v51 = vsel %vm365_vm3, %v3567_v50, 0.0  ;;  %v3569_v54 = vpop.eup %3568 }
 0x330   : > { %582 = vadd.xlane.f32.xlu0 %v581_v51  ;;  %v578_v55 = vsel %vm365_vm3, %v3569_v54, 0.0 }
 0x335   : > { %3503 = vrot.lane.b32.xlu1 %v3927_v10, %s3756_s18 }
 0x346   : > { %3498 = vrot.lane.b32.xlu0 %v3927_v10, %s3757_s17 }
 0x34a   : > { %677 = vrot.lane.b32.xlu0 %v3937_v12, %s3758_s21 }
 0x359   : > { %579 = vadd.xlane.f32.xlu1 %v578_v55 }
 0x36a   : > { %675 = vrot.lane.b32.xlu1 %v3929_v11, %s3758_s21 }
 0x3b0   : > { %v383_v56 = vpop.xlane.xlu0 %382 }
 0x3b1   : > { %3570 = vrcp.f32 %v383_v56  ;;  %v380_v57 = vpop.xlane.xlu1 %379 }
 0x3b2   : > { %3572 = vrcp.f32 %v380_v57 }
 0x3b5   : > { %v3504_v63 = vpop.permute.xlu1 %3503 }
 0x3b6   : > { %v3506_v1 = vunpack.i.h.bf16 %v3504_v63  ;;  %v3505_v2 = vunpack.i.l.bf16 %v3504_v63 }
 0x3b8   : > { %v3296_v13 = vpack.c.bf16 %v3506_v1, %v3505_v2 }
 0x3bb   : > { %v3571_v58 = vpop.eup %3570 }
 0x3bc   : > { %v3573_v59 = vpop.eup %3572  ;;  %v387_v62 = vmul.f32 %v3571_v58, %v3563_v45 }
 0x3bd   : > { %v583_v60 = vpop.xlane.xlu0 %582  ;;  %v386_v61 = vmul.f32 %v3573_v59, %v3565_v46 }
 0x3be   : > { %3574 = vrcp.f32 %v583_v60 }
 0x3bf   : > { %3077 = vmatprep.mubr.msk.f32.mxu0 %vm365_vm3, %v386_v61 }
 0x3c0   : > { %3078 = vmatmul.mubr.msk.f32.vlgmr.msra.gmra.mrb[2].mxu0 %vm365_vm3, %v387_v62 }
 0x3c1   : > { %v3499_v0 = vpop.permute.xlu0 %3498 }
 0x3c2   : > { %v3501_v4 = vunpack.i.h.bf16 %v3499_v0  ;;  %v3500_v8 = vunpack.i.l.bf16 %v3499_v0 }
 0x3c4   : > { %v3292_v9 = vpack.c.bf16 %v3501_v4, %v3500_v8 }
 0x3c5   : > { %v678_v21 = vpop.permute.xlu0 %677 }
 0x3c6   : > { %3293 = vmatprep.subr.bf16.mxu0 %v3292_v9 }
 0x3c7   : > { %3295 = vmatpush3.bf16.msra.mxu0 %v3292_v9 }
 0x3c8   : > { %3298 = vmatprep.subr.msk.bf16.mxu0 %vm3945_vm2, %v3296_v13  ;;  %v3575_v15 = vpop.eup %3574 }
 0x3c9   : > { %v587_v19 = vmul.f32 %v3575_v15, %v3567_v50 }
 0x3e6   : > { %v580_v14 = vpop.xlane.xlu1 %579 }
 0x3e7   : > { %3576 = vrcp.f32 %v580_v14 }
 0x3ea   : > { %v676_v20 = vpop.permute.xlu1 %675 }
 0x3f1   : > { %v3577_v17 = vpop.eup %3576 }
 0x3f2   : > { %v586_v18 = vmul.f32 %v3577_v17, %v3569_v54 }
 0x3f4   : > { %3091 = vmatprep.mubr.msk.f32.mxu0 %vm365_vm3, %v586_v18 }
 0x3f5   : > { %3092 = vmatmul.mubr.msk.f32.vlgmr.msra.gmra.mrb[4].mxu0 %vm365_vm3, %v587_v19 }
 0x3f6   : > { %3301 = vmatpush3.bf16.xpose.msk.msra.mxu0 %vm3945_vm2, %v3296_v13  ;;  %3098 = vmatprep.mubr.msk.f32.mxu0 %vm279_vm1, %v676_v20 }
 0x3fd   : > { %3099 = vmatmul.mubr.msk.f32.vlgmr.msra.gmra.mrb[6].mxu0 %vm279_vm1, %v678_v21 }
 0x493   : > { %v3989_v22 = vpop.f32.mrb[2].mxu0 }
 0x494   : > { %v3991_v23 = vpop.f32.mrb[3].mxu0 }
 0x4c8   : > { %v3993_v24 = vpop.f32.mrb[4].mxu0 }
 0x4c9   : > { %v3995_v25 = vpop.f32.mrb[5].mxu0 }
 0x4d0   : > { %v3100_v26 = vpop.f32.mrb[6].mxu0 }
 0x4d1   : > { %v757_v27 = vpop.f32.mrb[7].mxu0  ;;  %v769_v28 = vsel %vm365_vm3, %v3100_v26, -inf }
 0x4d2   : > { %770 = vmax.xlane.f32.xlu0 %v769_v28  ;;  %v766_v29 = vsel %vm365_vm3, %v757_v27, -inf }
 0x4d3   : > { %767 = vmax.xlane.f32.xlu1 %v766_v29 }
 0x55f   : > { %v771_v30 = vpop.xlane.xlu0 %770 }
 0x560   : > { %v773_v31 = vsub.f32 %v3100_v26, %v771_v30  ;;  %v768_v32 = vpop.xlane.xlu1 %767 }
 0x561   : > { %v772_v33 = vsub.f32 %v757_v27, %v768_v32  ;;  %v188_v27 = vld [vmem:[#allocation4 + $0x38] sm:$0xff] }
 0x562   : > { %v776_v34 = vmul.f32 1.442695, %v773_v31 }
 0x563   : > { %v774_v35 = vmul.f32 1.442695, %v772_v33 }
 0x564   : > { %3578 = vpow2.f32 %v776_v34 }
 0x565   : > { %3580 = vpow2.f32 %v774_v35 }
 0x56e   : > { %v3579_v36 = vpop.eup %3578 }
 0x56f   : > { %v3581_v37 = vpop.eup %3580  ;;  %v781_v38 = vsel %vm365_vm3, %v3579_v36, 0.0 }
 0x570   : > { %782 = vadd.xlane.f32.xlu1 %v781_v38  ;;  %v778_v39 = vsel %vm365_vm3, %v3581_v37, 0.0 }
 0x571   : > { %779 = vadd.xlane.f32.xlu0 %v778_v39 }
 0x581   : > { %3513 = vrot.lane.b32.xlu1 %v3927_v10, %s3759_s20 }
 0x585   : > { %875 = vrot.lane.b32.xlu1 %v3929_v11, %s3760_s12 }
 0x587   : > { %3508 = vrot.lane.b32.xlu0 %v3927_v10, %s3761_s23 }
 0x58b   : > { %877 = vrot.lane.b32.xlu0 %v3937_v12, %s3760_s12 }
 0x5fd   : > { %v783_v40 = vpop.xlane.xlu1 %782 }
 0x5fe   : > { %3582 = vrcp.f32 %v783_v40  ;;  %v780_v41 = vpop.xlane.xlu0 %779 }
 0x5ff   : > { %3584 = vrcp.f32 %v780_v41 }
 0x601   : > { %v3514_v42 = vpop.permute.xlu1 %3513 }
 0x602   : > { %v3509_v43 = vpop.permute.xlu0 %3508  ;;  %v3516_v44 = vunpack.i.h.bf16 %v3514_v42  ;;  %v3515_v45 = vunpack.i.l.bf16 %v3514_v42 }
 0x603   : > { %v3511_v46 = vunpack.i.h.bf16 %v3509_v43  ;;  %v3510_v47 = vunpack.i.l.bf16 %v3509_v43 }
 0x604   : > { %v3306_v49 = vpack.c.bf16 %v3516_v44, %v3515_v45 }
 0x605   : > { %v3302_v48 = vpack.c.bf16 %v3511_v46, %v3510_v47  ;;  %v876_v52 = vpop.permute.xlu1 %875 }
 0x606   : > { %v878_v53 = vpop.permute.xlu0 %877 }
 0x607   : > { %3303 = vmatprep.subr.bf16.mxu1 %v3302_v48 }
 0x608   : > { %v3583_v11 = vpop.eup %3582  ;;  %3305 = vmatpush3.bf16.msra.mxu1 %v3302_v48 }
 0x609   : > { %v3585_v50 = vpop.eup %3584  ;;  %3308 = vmatprep.subr.msk.bf16.mxu1 %vm3945_vm2, %v3306_v49  ;;  %v787_v51 = vmul.f32 %v3583_v11, %v3579_v36 }
 0x60a   : > { %v786_v12 = vmul.f32 %v3585_v50, %v3581_v37 }
 0x60c   : > { %3105 = vmatprep.mubr.msk.f32.mxu1 %vm365_vm3, %v786_v12 }
 0x60d   : > { %3106 = vmatmul.mubr.msk.f32.vlgmr.msra.gmra.mrb[4].mxu1 %vm365_vm3, %v787_v51 }
 0x60e   : > { %3112 = vmatprep.mubr.msk.f32.mxu1 %vm279_vm1, %v876_v52 }
 0x611   : > { %3311 = vmatpush3.bf16.xpose.msk.msra.mxu1 %vm3945_vm2, %v3306_v49 }
 0x612   : > { %3325 = vmatprep.subr.bf16.mxu1 %v3911_v3 }
 0x618   : > { %3113 = vmatmul.mubr.msk.f32.vlgmr.msra.gmra.mrb[6].mxu1 %vm279_vm1, %v878_v53 }
 0x619   : > { %3327 = vmatpush3.bf16.msra.mxu1 %v3911_v3 }
 0x61a   : > { %3329 = vmatprep.subr.bf16.mxu1 %v3915_v6 }
 0x61d   : > { %3331 = vmatpush3.bf16.msra.mxu1 %v3915_v6 }
 0x6e0   : > { %v3107_v54 = vpop.f32.mrb[4].mxu1 }
 0x6e1   : > { %v866_v55 = vpop.f32.mrb[5].mxu1 }
 0x6eb   : > { %v3114_v56 = vpop.f32.mrb[6].mxu1 }
 0x6ec   : > { %v957_v57 = vpop.f32.mrb[7].mxu1  ;;  %v969_v58 = vsel %vm365_vm3, %v3114_v56, -inf }
 0x6ed   : > { %970 = vmax.xlane.f32.xlu0 %v969_v58  ;;  %v966_v59 = vsel %vm365_vm3, %v957_v57, -inf }
 0x6ee   : > { %967 = vmax.xlane.f32.xlu1 %v966_v59 }
 0x77a   : > { %v971_v60 = vpop.xlane.xlu0 %970 }
 0x77b   : > { %v973_v61 = vsub.f32 %v3114_v56, %v971_v60  ;;  %v968_v62 = vpop.xlane.xlu1 %967 }
 0x77c   : > { %v972_v63 = vsub.f32 %v957_v57, %v968_v62 }
 0x77d   : > { %v976_v0 = vmul.f32 1.442695, %v973_v61 }
 0x77e   : > { %v974_v3 = vmul.f32 1.442695, %v972_v63 }
 0x77f   : > { %3586 = vpow2.f32 %v976_v0 }
 0x780   : > { %3588 = vpow2.f32 %v974_v3 }
 0x789   : > { %v3587_v1 = vpop.eup %3586 }
 0x78a   : > { %v3589_v6 = vpop.eup %3588  ;;  %v981_v2 = vsel %vm365_vm3, %v3587_v1, 0.0 }
 0x78b   : > { %982 = vadd.xlane.f32.xlu1 %v981_v2  ;;  %v978_v4 = vsel %vm365_vm3, %v3589_v6, 0.0 }
 0x78c   : > { %979 = vadd.xlane.f32.xlu0 %v978_v4 }
 0x79c   : > { %1077 = vrot.lane.b32.xlu1 %v3995_v25, %s3762_s24  ;;  %v187_v25 = vld [vmem:[#allocation4 + $0x30] sm:$0xff] }
 0x79d   : > { %v4037_v28 = vpack.c.bf16 %v188_v27, %v187_v25 }
 0x7a0   : > { %1079 = vrot.lane.b32.xlu1 %v3993_v24, %s3762_s24  ;;  %v186_v24 = vld [vmem:[#allocation4 + $0x28] sm:$0xff] }
 0x7a2   : > { %3518 = vrot.lane.b32.xlu0 %v3927_v10, %s3763_s25  ;;  %v185_v10 = vld [vmem:[#allocation4 + $0x20] sm:$0xff] }
 0x7a3   : > { %v4035_v26 = vpack.c.bf16 %v186_v24, %v185_v10 }
 0x7a4   : > { %1087 = vrot.lane.b32.xlu1 %v3107_v54, %s3764_s26 }
 0x7a6   : > { %1085 = vrot.lane.b32.xlu0 %v866_v55, %s3764_s26 }
 0x818   : > { %v983_v8 = vpop.xlane.xlu1 %982 }
 0x819   : > { %3590 = vrcp.f32 %v983_v8  ;;  %v980_v9 = vpop.xlane.xlu0 %979 }
 0x81a   : > { %3592 = vrcp.f32 %v980_v9 }
 0x81c   : > { %v1078_v31 = vpop.permute.xlu1 %1077 }
 0x81d   : > { %v3519_v13 = vpop.permute.xlu0 %3518  ;;  %v1099_v35 = vsel %vm279_vm1, %v3991_v23, %v1078_v31 }
 0x81e   : > { %v3521_v14 = vunpack.i.h.bf16 %v3519_v13  ;;  %v3520_v15 = vunpack.i.l.bf16 %v3519_v13 }
 0x820   : > { %v3312_v17 = vpack.c.bf16 %v3521_v14, %v3520_v15  ;;  %v1080_v32 = vpop.permute.xlu1 %1079 }
 0x821   : > { %v1086_v34 = vpop.permute.xlu0 %1085  ;;  %v1100_v37 = vsel %vm279_vm1, %v3989_v22, %v1080_v32 }
 0x822   : > { %3313 = vmatprep.subr.bf16.mxu0 %v3312_v17  ;;  %v1101_v38 = vsel %vm365_vm3, %v1099_v35, %v1086_v34 }
 0x823   : > { %v3591_v18 = vpop.eup %3590  ;;  %3315 = vmatpush3.bf16.msra.mxu0 %v3312_v17 }
 0x824   : > { %v3593_v19 = vpop.eup %3592  ;;  %v987_v21 = vmul.f32 %v3591_v18, %v3587_v1  ;;  %3317 = vmatprep.subr.bf16.mxu0 %v4035_v26  ;;  %v1088_v33 = vpop.permute.xlu1 %1087 }
 0x825   : > { %v986_v20 = vmul.f32 %v3593_v19, %v3589_v6  ;;  %v1102_v40 = vsel %vm365_vm3, %v1100_v37, %v1088_v33 }
 0x827   : > { %3119 = vmatprep.mubr.msk.f32.mxu0 %vm365_vm3, %v986_v20 }
 0x828   : > { %3120 = vmatmul.mubr.msk.f32.vlgmr.msra.gmra.mrb[8].mxu0 %vm365_vm3, %v987_v21 }
 0x829   : > { %3319 = vmatpush3.bf16.msra.mxu0 %v4035_v26 }
 0x82a   : > { %3321 = vmatprep.subr.bf16.mxu0 %v4037_v28 }
 0x82d   : > { %3323 = vmatpush3.bf16.msra.mxu0 %v4037_v28 }
 0x8fb   : > { %v3121_v29 = vpop.f32.mrb[8].mxu0 }
 0x8fc   : > { %1095 = vrot.lane.b32.xlu1 %v3121_v29, %s3765_s27  ;;  %v1066_v30 = vpop.f32.mrb[9].mxu0 }
 0x8fd   : > { %1093 = vrot.lane.b32.xlu0 %v1066_v30, %s3765_s27 }
 0x96e   : > { %v1096_v36 = vpop.permute.xlu1 %1095 }
 0x96f   : > { %v1094_v39 = vpop.permute.xlu0 %1093  ;;  %v1105_v42 = vsel %vm1103_vm4, %v1102_v40, %v1096_v36 }
 0x970   : > { %v1104_v41 = vsel %vm1103_vm4, %v1101_v38, %v1094_v39 }
 0x971   : > { %3130 = vmatprep.mubr.msk.f32.mxu0 %vm189_vm0, %v1104_v41 }
 0x972   : > { %3131 = vmatmul.mubr.msk.f32.vlgmr.msra.gmra.mrb[10].mxu0 %vm189_vm0, %v1105_v42 }
 0xa45   : > { %v3132_v43 = vpop.f32.mrb[10].mxu0 }
 0xa46   : > { %v1178_v44 = vpop.f32.mrb[11].mxu0  ;;  %v4059_v22 = vadd.f32 %v3132_v43, %v3923_v7 }
 0xa47   : > { %v4056_v23 = vadd.f32 %v1178_v44, %v3913_v5 }
 0xa49   : > { %3141 = vmatprep.mubr.msk.f32.mxu1 %vm189_vm0, %v4056_v23 }
 0xa4a   : > { %3142 = vmatmul.mubr.msk.f32.vlgmr.msra.gmra.mrb[8].mxu1 %vm189_vm0, %v4059_v22 }
 0xb1d   : > { %v3143_v45 = vpop.f32.mrb[8].mxu1 }
 0xb1e   : > { %v1261_v46 = vpop.f32.mrb[9].mxu1  ;;  %v4077_v50 = vmul.f32 0.35355338, %v3143_v45 }
 0xb1f   : > { %v4065_v47 = vpack.i.bf16 %v3143_v45, %v1261_v46  ;;  %v4067_v48 = vmul.f32 0.35355338, %v1261_v46 }
 0xb21   : > { %3523 = vrot.lane.b32.xlu0 %v4065_v47, %s3752_s14  ;;  %3148 = vmatprep.mubr.msk.f32.mxu0 %vm279_vm1, %v4067_v48 }
 0xb93   : > { %v3524_v5 = vpop.permute.xlu0 %3523 }
 0xb94   : > { %v3526_v7 = vunpack.i.h.bf16 %v3524_v5  ;;  %v3525_v49 = vunpack.i.l.bf16 %v3524_v5 }
 0xb96   : > { %v3332_v11 = vpack.c.bf16 %v3526_v7, %v3525_v49 }
 0xb98   : > { %3334 = vmatprep.subr.msk.bf16.mxu0 %vm3945_vm2, %v3332_v11 }
 0xb99   : > { %3337 = vmatpush3.bf16.xpose.msk.msra.mxu0 %vm3945_vm2, %v3332_v11 }
 0xba0   : > { %3149 = vmatmul.mubr.msk.f32.vlgmr.msra.gmra.mrb[12].mxu0 %vm279_vm1, %v4077_v50 }
 0xc73   : > { %v3150_v12 = vpop.f32.mrb[12].mxu0 }
 0xc74   : > { %v1354_v51 = vpop.f32.mrb[13].mxu0  ;;  %v1366_v52 = vsel %vm365_vm3, %v3150_v12, -inf }
 0xc75   : > { %1367 = vmax.xlane.f32.xlu0 %v1366_v52  ;;  %v1363_v53 = vsel %vm365_vm3, %v1354_v51, -inf }
 0xc76   : > { %1364 = vmax.xlane.f32.xlu1 %v1363_v53 }
 0xd02   : > { %v1368_v54 = vpop.xlane.xlu0 %1367 }
 0xd03   : > { %v1370_v55 = vsub.f32 %v3150_v12, %v1368_v54  ;;  %v1365_v56 = vpop.xlane.xlu1 %1364 }
 0xd04   : > { %v1369_v57 = vsub.f32 %v1354_v51, %v1365_v56 }
 0xd05   : > { %v1373_v58 = vmul.f32 1.442695, %v1370_v55 }
 0xd06   : > { %v1371_v59 = vmul.f32 1.442695, %v1369_v57 }
 0xd07   : > { %3594 = vpow2.f32 %v1373_v58 }
 0xd08   : > { %3596 = vpow2.f32 %v1371_v59 }
 0xd11   : > { %v3595_v60 = vpop.eup %3594 }
 0xd12   : > { %v3597_v61 = vpop.eup %3596  ;;  %v1378_v62 = vsel %vm365_vm3, %v3595_v60, 0.0 }
 0xd13   : > { %1379 = vadd.xlane.f32.xlu1 %v1378_v62  ;;  %v1375_v63 = vsel %vm365_vm3, %v3597_v61, 0.0 }
 0xd14   : > { %1376 = vadd.xlane.f32.xlu0 %v1375_v63 }
 0xd24   : > { %3533 = vrot.lane.b32.xlu1 %v4065_v47, %s3754_s30 }
 0xd28   : > { %1472 = vrot.lane.b32.xlu1 %v4067_v48, %s3753_s15 }
 0xd2a   : > { %3528 = vrot.lane.b32.xlu0 %v4065_v47, %s3755_s3 }
 0xd2e   : > { %1474 = vrot.lane.b32.xlu0 %v4077_v50, %s3753_s15 }
 0xda0   : > { %v1380_v0 = vpop.xlane.xlu1 %1379 }
 0xda1   : > { %3598 = vrcp.f32 %v1380_v0  ;;  %v1377_v3 = vpop.xlane.xlu0 %1376 }
 0xda2   : > { %3600 = vrcp.f32 %v1377_v3 }
 0xda4   : > { %v3534_v1 = vpop.permute.xlu1 %3533 }
 0xda5   : > { %v3529_v6 = vpop.permute.xlu0 %3528  ;;  %v3536_v2 = vunpack.i.h.bf16 %v3534_v1  ;;  %v3535_v4 = vunpack.i.l.bf16 %v3534_v1 }
 0xda6   : > { %v3531_v8 = vunpack.i.h.bf16 %v3529_v6  ;;  %v3530_v9 = vunpack.i.l.bf16 %v3529_v6 }
 0xda7   : > { %v3342_v14 = vpack.c.bf16 %v3536_v2, %v3535_v4 }
 0xda8   : > { %v3338_v13 = vpack.c.bf16 %v3531_v8, %v3530_v9  ;;  %v1473_v20 = vpop.permute.xlu1 %1472 }
 0xda9   : > { %v1475_v21 = vpop.permute.xlu0 %1474 }
 0xdaa   : > { %3339 = vmatprep.subr.bf16.mxu1 %v3338_v13 }
 0xdab   : > { %v3599_v15 = vpop.eup %3598  ;;  %3341 = vmatpush3.bf16.msra.mxu1 %v3338_v13 }
 0xdac   : > { %v3601_v17 = vpop.eup %3600  ;;  %3344 = vmatprep.subr.msk.bf16.mxu1 %vm3945_vm2, %v3342_v14  ;;  %v1384_v19 = vmul.f32 %v3599_v15, %v3595_v60 }
 0xdad   : > { %v1383_v18 = vmul.f32 %v3601_v17, %v3597_v61 }
 0xdaf   : > { %3155 = vmatprep.mubr.msk.f32.mxu1 %vm365_vm3, %v1383_v18 }
 0xdb0   : > { %3156 = vmatmul.mubr.msk.f32.vlgmr.msra.gmra.mrb[10].mxu1 %vm365_vm3, %v1384_v19 }
 0xdb1   : > { %3162 = vmatprep.mubr.msk.f32.mxu1 %vm279_vm1, %v1473_v20 }
 0xdb4   : > { %3347 = vmatpush3.bf16.xpose.msk.msra.mxu1 %vm3945_vm2, %v3342_v14 }
 0xdbb   : > { %3163 = vmatmul.mubr.msk.f32.vlgmr.msra.gmra.mrb[12].mxu1 %vm279_vm1, %v1475_v21 }
 0xe83   : > { %v4101_v10 = vpop.f32.mrb[10].mxu1 }
 0xe84   : > { %v4103_v24 = vpop.f32.mrb[11].mxu1 }
 0xe8e   : > { %v3164_v25 = vpop.f32.mrb[12].mxu1 }
 0xe8f   : > { %v1554_v27 = vpop.f32.mrb[13].mxu1  ;;  %v1566_v29 = vsel %vm365_vm3, %v3164_v25, -inf }
 0xe90   : > { %1567 = vmax.xlane.f32.xlu0 %v1566_v29  ;;  %v1563_v30 = vsel %vm365_vm3, %v1554_v27, -inf }
 0xe91   : > { %1564 = vmax.xlane.f32.xlu1 %v1563_v30 }
 0xf1d   : > { %v1568_v31 = vpop.xlane.xlu0 %1567 }
 0xf1e   : > { %v1570_v32 = vsub.f32 %v3164_v25, %v1568_v31  ;;  %v1565_v33 = vpop.xlane.xlu1 %1564 }
 0xf1f   : > { %v1569_v34 = vsub.f32 %v1554_v27, %v1565_v33 }
 0xf20   : > { %v1573_v35 = vmul.f32 1.442695, %v1570_v32 }
 0xf21   : > { %v1571_v36 = vmul.f32 1.442695, %v1569_v34 }
 0xf22   : > { %3602 = vpow2.f32 %v1573_v35 }
 0xf23   : > { %3604 = vpow2.f32 %v1571_v36 }
 0xf2c   : > { %v3603_v37 = vpop.eup %3602 }
 0xf2d   : > { %v3605_v38 = vpop.eup %3604  ;;  %v1578_v39 = vsel %vm365_vm3, %v3603_v37, 0.0 }
 0xf2e   : > { %1579 = vadd.xlane.f32.xlu1 %v1578_v39  ;;  %v1575_v40 = vsel %vm365_vm3, %v3605_v38, 0.0 }
 0xf2f   : > { %1576 = vadd.xlane.f32.xlu0 %v1575_v40 }
 0xf3f   : > { %3543 = vrot.lane.b32.xlu1 %v4065_v47, %s3756_s18 }
 0xf43   : > { %1672 = vrot.lane.b32.xlu1 %v4067_v48, %s3758_s21 }
 0xf45   : > { %3538 = vrot.lane.b32.xlu0 %v4065_v47, %s3757_s17 }
 0xf49   : > { %1674 = vrot.lane.b32.xlu0 %v4077_v50, %s3758_s21 }
 0xfbb   : > { %v1580_v41 = vpop.xlane.xlu1 %1579 }
 0xfbc   : > { %3606 = vrcp.f32 %v1580_v41  ;;  %v1577_v42 = vpop.xlane.xlu0 %1576 }
 0xfbd   : > { %3608 = vrcp.f32 %v1577_v42 }
 0xfbf   : > { %v3544_v43 = vpop.permute.xlu1 %3543 }
 0xfc0   : > { %v3539_v44 = vpop.permute.xlu0 %3538  ;;  %v3546_v45 = vunpack.i.h.bf16 %v3544_v43  ;;  %v3545_v46 = vunpack.i.l.bf16 %v3544_v43 }
 0xfc1   : > { %v3541_v5 = vunpack.i.h.bf16 %v3539_v44  ;;  %v3540_v7 = vunpack.i.l.bf16 %v3539_v44 }
 0xfc2   : > { %v3352_v11 = vpack.c.bf16 %v3546_v45, %v3545_v46 }
 0xfc3   : > { %v3348_v49 = vpack.c.bf16 %v3541_v5, %v3540_v7  ;;  %v1673_v54 = vpop.permute.xlu1 %1672 }
 0xfc4   : > { %v1675_v55 = vpop.permute.xlu0 %1674 }
 0xfc5   : > { %3349 = vmatprep.subr.bf16.mxu0 %v3348_v49 }
 0xfc6   : > { %v3607_v12 = vpop.eup %3606  ;;  %3351 = vmatpush3.bf16.msra.mxu0 %v3348_v49 }
 0xfc7   : > { %v3609_v51 = vpop.eup %3608  ;;  %3354 = vmatprep.subr.msk.bf16.mxu0 %vm3945_vm2, %v3352_v11  ;;  %v1584_v53 = vmul.f32 %v3607_v12, %v3603_v37 }
 0xfc8   : > { %v1583_v52 = vmul.f32 %v3609_v51, %v3605_v38 }
 0xfca   : > { %3169 = vmatprep.mubr.msk.f32.mxu0 %vm365_vm3, %v1583_v52 }
 0xfcb   : > { %3170 = vmatmul.mubr.msk.f32.vlgmr.msra.gmra.mrb[14].mxu0 %vm365_vm3, %v1584_v53 }
 0xfcc   : > { %3176 = vmatprep.mubr.msk.f32.mxu0 %vm279_vm1, %v1673_v54 }
 0xfcf   : > { %3357 = vmatpush3.bf16.xpose.msk.msra.mxu0 %vm3945_vm2, %v3352_v11 }
 0xfd6   : > { %3177 = vmatmul.mubr.msk.f32.vlgmr.msra.gmra.mrb[16].mxu0 %vm279_vm1, %v1675_v55 }
0x109e   : > { %v4125_v56 = vpop.f32.mrb[14].mxu0 }
0x109f   : > { %v4127_v57 = vpop.f32.mrb[15].mxu0 }
0x10a9   : > { %v3178_v58 = vpop.f32.mrb[16].mxu0 }
0x10aa   : > { %v1754_v59 = vpop.f32.mrb[17].mxu0  ;;  %v1766_v60 = vsel %vm365_vm3, %v3178_v58, -inf }
0x10ab   : > { %1767 = vmax.xlane.f32.xlu0 %v1766_v60  ;;  %v1763_v61 = vsel %vm365_vm3, %v1754_v59, -inf }
0x10ac   : > { %1764 = vmax.xlane.f32.xlu1 %v1763_v61 }
0x1138   : > { %v1768_v62 = vpop.xlane.xlu0 %1767 }
0x1139   : > { %v1770_v63 = vsub.f32 %v3178_v58, %v1768_v62  ;;  %v1765_v0 = vpop.xlane.xlu1 %1764 }
0x113a   : > { %v1769_v3 = vsub.f32 %v1754_v59, %v1765_v0 }
0x113b   : > { %v1773_v1 = vmul.f32 1.442695, %v1770_v63 }
0x113c   : > { %v1771_v6 = vmul.f32 1.442695, %v1769_v3 }
0x113d   : > { %3610 = vpow2.f32 %v1773_v1 }
0x113e   : > { %3612 = vpow2.f32 %v1771_v6 }
0x1147   : > { %v3611_v2 = vpop.eup %3610 }
0x1148   : > { %v3613_v4 = vpop.eup %3612  ;;  %v1778_v8 = vsel %vm365_vm3, %v3611_v2, 0.0 }
0x1149   : > { %1779 = vadd.xlane.f32.xlu1 %v1778_v8  ;;  %v1775_v9 = vsel %vm365_vm3, %v3613_v4, 0.0 }
0x114a   : > { %1776 = vadd.xlane.f32.xlu0 %v1775_v9  ;;  %v2192_v9 = vld [vmem:[#allocation4 + $0x50] sm:$0xff] }
0x115a   : > { %3553 = vrot.lane.b32.xlu1 %v4065_v47, %s3759_s20 }
0x115e   : > { %1872 = vrot.lane.b32.xlu1 %v4067_v48, %s3760_s12 }
0x1160   : > { %3548 = vrot.lane.b32.xlu0 %v4065_v47, %s3761_s23 }
0x1164   : > { %1874 = vrot.lane.b32.xlu0 %v4077_v50, %s3760_s12 }
0x11d6   : > { %v1780_v13 = vpop.xlane.xlu1 %1779 }
0x11d7   : > { %3614 = vrcp.f32 %v1780_v13  ;;  %v1777_v14 = vpop.xlane.xlu0 %1776  ;;  %v2193_v13 = vld [vmem:[#allocation4 + $0x58] sm:$0xff] }
0x11d8   : > { %3616 = vrcp.f32 %v1777_v14  ;;  %v2279_v14 = vld [vmem:[#allocation4 + $0x60] sm:$0xff] }
0x11da   : > { %v3554_v15 = vpop.permute.xlu1 %3553 }
0x11db   : > { %v3549_v17 = vpop.permute.xlu0 %3548  ;;  %v3556_v18 = vunpack.i.h.bf16 %v3554_v15  ;;  %v3555_v19 = vunpack.i.l.bf16 %v3554_v15 }
0x11dc   : > { %v3551_v20 = vunpack.i.h.bf16 %v3549_v17  ;;  %v3550_v21 = vunpack.i.l.bf16 %v3549_v17 }
0x11dd   : > { %v3362_v27 = vpack.c.bf16 %v3556_v18, %v3555_v19 }
0x11de   : > { %v3358_v25 = vpack.c.bf16 %v3551_v20, %v3550_v21  ;;  %v1873_v31 = vpop.permute.xlu1 %1872  ;;  %v2281_v21 = vld [vmem:[#allocation4 + $0x70] sm:$0xff] }
0x11df   : > { %v1875_v32 = vpop.permute.xlu0 %1874 }
0x11e0   : > { %3359 = vmatprep.subr.bf16.mxu1 %v3358_v25 }
0x11e1   : > { %v3615_v48 = vpop.eup %3614  ;;  %3361 = vmatpush3.bf16.msra.mxu1 %v3358_v25  ;;  %v2282_v25 = vld [vmem:[#allocation4 + $0x78] sm:$0xff] }
0x11e2   : > { %v3617_v29 = vpop.eup %3616  ;;  %3364 = vmatprep.subr.msk.bf16.mxu1 %vm3945_vm2, %v3362_v27  ;;  %v1784_v30 = vmul.f32 %v3615_v48, %v3611_v2  ;;  %v2908_v48 = vld [vmem:[#allocation4 + $0xc0] ss:$0 sm:$0xff] }
0x11e3   : > { %v1783_v50 = vmul.f32 %v3617_v29, %v3613_v4 }
0x11e5   : > { %3183 = vmatprep.mubr.msk.f32.mxu1 %vm365_vm3, %v1783_v50 }
0x11e6   : > { %3184 = vmatmul.mubr.msk.f32.vlgmr.msra.gmra.mrb[14].mxu1 %vm365_vm3, %v1784_v30 }
0x11e7   : > { %3190 = vmatprep.mubr.msk.f32.mxu1 %vm279_vm1, %v1873_v31 }
0x11ea   : > { %3367 = vmatpush3.bf16.xpose.msk.msra.mxu1 %vm3945_vm2, %v3362_v27  ;;  %v3392_v27 = vpack.c.bf16 %v2282_v25, %v2281_v21  ;;  %v2625_v21 = vld [vmem:[#allocation4 + $0x90] sm:$0xff] }
0x11f1   : > { %3191 = vmatmul.mubr.msk.f32.vlgmr.msra.gmra.mrb[16].mxu1 %vm279_vm1, %v1875_v32 }
0x12b9   : > { %v3185_v33 = vpop.f32.mrb[14].mxu1 }
0x12ba   : > { %v1863_v34 = vpop.f32.mrb[15].mxu1 }
0x12c4   : > { %v3192_v35 = vpop.f32.mrb[16].mxu1 }
0x12c5   : > { %v1954_v36 = vpop.f32.mrb[17].mxu1  ;;  %v1966_v37 = vsel %vm365_vm3, %v3192_v35, -inf }
0x12c6   : > { %1967 = vmax.xlane.f32.xlu0 %v1966_v37  ;;  %v1963_v38 = vsel %vm365_vm3, %v1954_v36, -inf }
0x12c7   : > { %1964 = vmax.xlane.f32.xlu1 %v1963_v38 }
0x1353   : > { %v1968_v39 = vpop.xlane.xlu0 %1967 }
0x1354   : > { %v1970_v40 = vsub.f32 %v3192_v35, %v1968_v39  ;;  %v1965_v41 = vpop.xlane.xlu1 %1964 }
0x1355   : > { %v1969_v42 = vsub.f32 %v1954_v36, %v1965_v41 }
0x1356   : > { %v1973_v43 = vmul.f32 1.442695, %v1970_v40 }
0x1357   : > { %v1971_v16 = vmul.f32 1.442695, %v1969_v42 }
0x1358   : > { %3618 = vpow2.f32 %v1973_v43 }
0x1359   : > { %3620 = vpow2.f32 %v1971_v16 }
0x1362   : > { %v3619_v44 = vpop.eup %3618 }
0x1363   : > { %v3621_v45 = vpop.eup %3620  ;;  %v1978_v46 = vsel %vm365_vm3, %v3619_v44, 0.0 }
0x1364   : > { %1979 = vadd.xlane.f32.xlu1 %v1978_v46  ;;  %v1975_v5 = vsel %vm365_vm3, %v3621_v45, 0.0 }
0x1365   : > { %1976 = vadd.xlane.f32.xlu0 %v1975_v5 }
0x1375   : > { %2074 = vrot.lane.b32.xlu1 %v4127_v57, %s3762_s24  ;;  %v2191_v57 = vld [vmem:[#allocation4 + $0x48] sm:$0xff] }
0x1379   : > { %2076 = vrot.lane.b32.xlu1 %v4125_v56, %s3762_s24  ;;  %v2190_v56 = vld [vmem:[#allocation4 + $0x40] sm:$0xff] }
0x137a   : > { %v3380_v58 = vpack.c.bf16 %v2191_v57, %v2190_v56 }
0x137b   : > { %3558 = vrot.lane.b32.xlu0 %v4065_v47, %s3763_s25 }
0x137c   : > { %3381 = vmatprep.subr.bf16.mxu1 %v3380_v58 }
0x137d   : > { %2084 = vrot.lane.b32.xlu1 %v3185_v33, %s3764_s26  ;;  %3383 = vmatpush3.bf16.msra.mxu1 %v3380_v58 }
0x137f   : > { %2082 = vrot.lane.b32.xlu0 %v1863_v34, %s3764_s26 }
0x13f1   : > { %v1980_v7 = vpop.xlane.xlu1 %1979 }
0x13f2   : > { %3622 = vrcp.f32 %v1980_v7  ;;  %v1977_v49 = vpop.xlane.xlu0 %1976 }
0x13f3   : > { %3624 = vrcp.f32 %v1977_v49 }
0x13f5   : > { %v2075_v61 = vpop.permute.xlu1 %2074 }
0x13f6   : > { %v3559_v11 = vpop.permute.xlu0 %3558 }
0x13f7   : > { %v3561_v12 = vunpack.i.h.bf16 %v3559_v11  ;;  %v3560_v51 = vunpack.i.l.bf16 %v3559_v11 }
0x13f9   : > { %v3368_v52 = vpack.c.bf16 %v3561_v12, %v3560_v51  ;;  %v2077_v62 = vpop.permute.xlu1 %2076 }
0x13fa   : > { %v2083_v0 = vpop.permute.xlu0 %2082 }
0x13fb   : > { %3369 = vmatprep.subr.bf16.mxu0 %v3368_v52 }
0x13fc   : > { %v3623_v53 = vpop.eup %3622  ;;  %3371 = vmatpush3.bf16.msra.mxu0 %v3368_v52 }
0x13fd   : > { %v3625_v54 = vpop.eup %3624  ;;  %3373 = vmatprep.subr.bf16.mxu0 %v4035_v26  ;;  %v1984_v47 = vmul.f32 %v3623_v53, %v3619_v44  ;;  %v2085_v63 = vpop.permute.xlu1 %2084 }
0x13fe   : > { %v1983_v55 = vmul.f32 %v3625_v54, %v3621_v45  ;;  %v2914_v54 = vld [vmem:[#allocation4 + $0xc2] ss:$0 sm:$0xff] }
0x1400   : > { %3197 = vmatprep.mubr.msk.f32.mxu0 %vm365_vm3, %v1983_v55 }
0x1401   : > { %3198 = vmatmul.mubr.msk.f32.vlgmr.msra.gmra.mrb[18].mxu0 %vm365_vm3, %v1984_v47  ;;  %v2915_v47 = vld [vmem:[#allocation4 + $0xc3] ss:$0 sm:$0xff] }
0x1402   : > { %3375 = vmatpush3.bf16.msra.mxu0 %v4035_v26  ;;  %v2096_v26 = vsel %vm279_vm1, %v4103_v24, %v2075_v61  ;;  %v3384_v24 = vpack.c.bf16 %v2193_v13, %v2192_v9 }
0x1403   : > { %3377 = vmatprep.subr.bf16.mxu0 %v4037_v28  ;;  %v2098_v1 = vsel %vm365_vm3, %v2096_v26, %v2083_v0 }
0x1404   : > { %3385 = vmatprep.subr.bf16.mxu1 %v3384_v24 }
0x1405   : > { %3387 = vmatpush3.bf16.msra.mxu1 %v3384_v24 }
0x1406   : > { %3379 = vmatpush3.bf16.msra.mxu0 %v4037_v28  ;;  %v2097_v28 = vsel %vm279_vm1, %v4101_v10, %v2077_v62  ;;  %v2280_v10 = vld [vmem:[#allocation4 + $0x68] sm:$0xff] }
0x1407   : > { %v2099_v2 = vsel %vm365_vm3, %v2097_v28, %v2085_v63  ;;  %v3388_v15 = vpack.c.bf16 %v2280_v10, %v2279_v14 }
0x1409   : > { %3389 = vmatprep.subr.bf16.mxu0 %v3388_v15  ;;  %3397 = vmatprep.subr.bf16.mxu1 %v3388_v15 }
0x14d4   : > { %v3199_v59 = vpop.f32.mrb[18].mxu0 }
0x14d5   : > { %2092 = vrot.lane.b32.xlu1 %v3199_v59, %s3765_s27  ;;  %v2063_v60 = vpop.f32.mrb[19].mxu0 }
0x14d6   : > { %2090 = vrot.lane.b32.xlu0 %v2063_v60, %s3765_s27 }
0x1547   : > { %v2093_v3 = vpop.permute.xlu1 %2092 }
0x1548   : > { %v2091_v6 = vpop.permute.xlu0 %2090  ;;  %v2101_v8 = vsel %vm1103_vm4, %v2099_v2, %v2093_v3 }
0x1549   : > { %v2100_v4 = vsel %vm1103_vm4, %v2098_v1, %v2091_v6 }
0x154a   : > { %3208 = vmatprep.mubr.msk.f32.mxu0 %vm189_vm0, %v2100_v4 }
0x154b   : > { %3209 = vmatmul.mubr.msk.f32.vlgmr.msra.gmra.mrb[20].mxu0 %vm189_vm0, %v2101_v8 }
0x154c   : > { %3391 = vmatpush3.bf16.msra.mxu0 %v3388_v15 }
0x154d   : > { %3393 = vmatprep.subr.bf16.mxu0 %v3392_v27 }
0x1550   : > { %3395 = vmatpush3.bf16.msra.mxu0 %v3392_v27 }
0x161e   : > { %v3210_v17 = vpop.f32.mrb[20].mxu0 }
0x161f   : > { %v2174_v18 = vpop.f32.mrb[21].mxu0  ;;  %v2184_v20 = vadd.f32 %v3210_v17, %v4059_v22 }
0x1620   : > { %v2183_v19 = vadd.f32 %v2174_v18, %v4056_v23  ;;  %v2911_v23 = vld [vmem:[#allocation4 + $0xc1] ss:$0 sm:$0xff] }
0x1621   : > { %v2522_v18 = vld [vmem:[#allocation4 + $0xa0] sm:$0xff] }
0x1622   : > { %3219 = vmatprep.mubr.msk.f32.mxu1 %vm189_vm0, %v2183_v19  ;;  %v2623_v19 = vld [vmem:[#allocation4 + $0x80] sm:$0xff] }
0x1623   : > { %3220 = vmatmul.mubr.msk.f32.vlgmr.msra.gmra.mrb[18].mxu1 %vm189_vm0, %v2184_v20  ;;  %v2624_v20 = vld [vmem:[#allocation4 + $0x88] sm:$0xff] }
0x1624   : > { %3399 = vmatpush3.bf16.msra.mxu1 %v3388_v15  ;;  %v3408_v25 = vpack.c.bf16 %v2624_v20, %v2623_v19 }
0x1625   : > { %3401 = vmatprep.subr.bf16.mxu1 %v3392_v27 }
0x1628   : > { %3403 = vmatpush3.bf16.msra.mxu1 %v3392_v27  ;;  %v2626_v27 = vld [vmem:[#allocation4 + $0x98] sm:$0xff] }
0x1629   : > { %3409 = vmatprep.subr.bf16.mxu1 %v3408_v25 }
0x16f6   : > { %v3221_v29 = vpop.f32.mrb[18].mxu1 }
0x16f7   : > { %v2270_v50 = vpop.f32.mrb[19].mxu1  ;;  %v2276_v31 = vadd.f32 %v3221_v29, %v2908_v48 }
0x16f8   : > { %v2271_v30 = vadd.f32 %v2908_v48, %v2270_v50  ;;  %v3412_v48 = vpack.c.bf16 %v2626_v27, %v2625_v21 }
0x16fa   : > { %3230 = vmatprep.mubr.msk.f32.mxu0 %vm189_vm0, %v2271_v30 }
0x16fb   : > { %3231 = vmatmul.mubr.msk.f32.vlgmr.msra.gmra.mrb[22].mxu0 %vm189_vm0, %v2276_v31 }
0x16fc   : > { %3248 = vmatprep.mubr.msk.f32.mxu0 %vm365_vm3, %v2522_v18 }
0x17ce   : > { %v3232_v22 = vpop.f32.mrb[22].mxu0 }
0x17cf   : > { %v2365_v32 = vadd.f32 %v3232_v22, %v2911_v23  ;;  %v2359_v33 = vpop.f32.mrb[23].mxu0 }
0x17d0   : > { %v2360_v34 = vadd.f32 %v2911_v23, %v2359_v33 }
0x17d1   : > { %v2369_v35 = vmax.f32 %v2365_v32, 0.0 }
0x17d2   : > { %v2368_v36 = vmax.f32 %v2360_v34, 0.0 }
0x17d3   : > { %v2373_v37 = vsel %vm189_vm0, %v2369_v35, 0.0 }
0x17d4   : > { %2374 = vadd.xlane.f32.xlu1 %v2373_v37  ;;  %v2370_v38 = vsel %vm189_vm0, %v2368_v36, 0.0 }
0x17d5   : > { %2371 = vadd.xlane.f32.xlu0 %v2370_v38 }
0x1861   : > { %v2375_v39 = vpop.xlane.xlu1 %2374 }
0x1862   : > { %v2378_v40 = vmul.f32 0.03125, %v2375_v39  ;;  %v2372_v41 = vpop.xlane.xlu0 %2371 }
0x1863   : > { %v2377_v42 = vmul.f32 0.03125, %v2372_v41  ;;  %v2523_v41 = vld [vmem:[#allocation4 + $0xa8] sm:$0xff] }
0x1864   : > { %v2380_v43 = vsub.f32 %v2369_v35, %v2378_v40 }
0x1865   : > { %v2379_v16 = vsub.f32 %v2368_v36, %v2377_v42  ;;  %v2524_v42 = vld [vmem:[#allocation4 + $0xb0] sm:$0xff] }
0x1866   : > { %v2382_v46 = vmul.f32 %v2380_v43, %v2380_v43 }
0x1867   : > { %v2381_v44 = vmul.f32 %v2379_v16, %v2379_v16 }
0x1868   : > { %v2386_v5 = vsel %vm189_vm0, %v2382_v46, 0.0 }
0x1869   : > { %v2383_v45 = vsel %vm189_vm0, %v2381_v44, 0.0 }
0x186a   : > { %2384 = vadd.xlane.f32.xlu0 %v2383_v45 }
0x186e   : > { %2387 = vadd.xlane.f32.xlu0 %v2386_v5  ;;  %v2922_v5 = vld [vmem:[#allocation4 + $0xc4] ss:$0 sm:$0xff] }
0x18f7   : > { %v2385_v7 = vpop.xlane.xlu0 %2384 }
0x18f8   : > { %v2389_v49 = vmul.f32 0.03125, %v2385_v7 }
0x18fa   : > { %v2391_v11 = vadd.f32 1e-05, %v2389_v49 }
0x18fb   : > { %v2388_v12 = vpop.xlane.xlu0 %2387 }
0x18fc   : > { %3626 = vrsqrt.f32 %v2391_v11  ;;  %v2390_v51 = vmul.f32 0.03125, %v2388_v12 }
0x18fe   : > { %v2392_v52 = vadd.f32 1e-05, %v2390_v51 }
0x1900   : > { %3628 = vrsqrt.f32 %v2392_v52 }
0x1906   : > { %v3627_v53 = vpop.eup %3626 }
0x1907   : > { %v2395_v55 = vmul.f32 %v3627_v53, %v2379_v16 }
0x1909   : > { %v2401_v56 = vmul.f32 %v2914_v54, %v2395_v55 }
0x190a   : > { %v3629_v57 = vpop.eup %3628 }
0x190b   : > { %v2396_v58 = vmul.f32 %v3629_v57, %v2380_v43  ;;  %v2407_v59 = vadd.f32 %v2915_v47, %v2401_v56  ;;  %v2525_v43 = vld [vmem:[#allocation4 + $0xb8] sm:$0xff] }
0x190d   : > { %3241 = vmatprep.mubr.msk.f32.mxu1 %vm189_vm0, %v2407_v59  ;;  %v2402_v60 = vmul.f32 %v2914_v54, %v2396_v58 }
0x190f   : > { %v2408_v61 = vadd.f32 %v2915_v47, %v2402_v60 }
0x1911   : > { %3242 = vmatmul.mubr.msk.f32.vlgmr.msra.gmra.mrb[20].mxu1 %vm189_vm0, %v2408_v61 }
0x1912   : > { %3411 = vmatpush3.bf16.msra.mxu1 %v3408_v25 }
0x1913   : > { %3413 = vmatprep.subr.bf16.mxu1 %v3412_v48 }
0x1916   : > { %3415 = vmatpush3.bf16.msra.mxu1 %v3412_v48 }
0x19e4   : > { %v3243_v62 = vpop.f32.mrb[20].mxu1 }
0x19e5   : > { %v2487_v63 = vadd.f32 %v3243_v62, %v2911_v23  ;;  %v2481_v0 = vpop.f32.mrb[21].mxu1  ;;  %v2728_v62 = vlaneseq }
0x19e6   : > { %v2482_v26 = vadd.f32 %v2911_v23, %v2481_v0 }
0x19e7   : > { %v2491_v3 = vmax.f32 %v2487_v63, 0.0 }
0x19e8   : > { %v2490_v28 = vmax.f32 %v2482_v26, 0.0 }
0x19e9   : > { %v2495_v1 = vsel %vm189_vm0, %v2491_v3, 0.0 }
0x19ea   : > { %2496 = vadd.xlane.f32.xlu0 %v2495_v1  ;;  %v2492_v6 = vsel %vm189_vm0, %v2490_v28, 0.0 }
0x19eb   : > { %2493 = vadd.xlane.f32.xlu1 %v2492_v6 }
0x1a77   : > { %v2497_v2 = vpop.xlane.xlu0 %2496 }
0x1a78   : > { %v2499_v4 = vmul.f32 0.03125, %v2497_v2  ;;  %v2494_v8 = vpop.xlane.xlu1 %2493 }
0x1a79   : > { %v2498_v9 = vmul.f32 0.03125, %v2494_v8 }
0x1a7a   : > { %v2501_v13 = vsub.f32 %v2491_v3, %v2499_v4 }
0x1a7b   : > { %v2500_v24 = vsub.f32 %v2490_v28, %v2498_v9  ;;  %v2729_v28 = vand.u32 127, %v2728_v62 }
0x1a7c   : > { %v2503_v14 = vmul.f32 %v2501_v13, %v2501_v13 }
0x1a7d   : > { %v2502_v10 = vmul.f32 %v2500_v24, %v2500_v24  ;;  %vm2730_vm5 = vcmp.eq.s32.totalorder %v2729_v28, 0 }
0x1a7e   : > { %v2507_v15 = vsel %vm189_vm0, %v2503_v14, 0.0 }
0x1a7f   : > { %2508 = vadd.xlane.f32.xlu0 %v2507_v15  ;;  %v2504_v17 = vsel %vm189_vm0, %v2502_v10, 0.0 }
0x1a80   : > { %2505 = vadd.xlane.f32.xlu1 %v2504_v17 }
0x1b0c   : > { %v2509_v29 = vpop.xlane.xlu0 %2508 }
0x1b0d   : > { %v2511_v50 = vmul.f32 0.03125, %v2509_v29  ;;  %v2506_v30 = vpop.xlane.xlu1 %2505 }
0x1b0e   : > { %v2510_v31 = vmul.f32 0.03125, %v2506_v30 }
0x1b0f   : > { %v2513_v23 = vadd.f32 1e-05, %v2511_v50 }
0x1b10   : > { %v2512_v22 = vadd.f32 1e-05, %v2510_v31 }
0x1b11   : > { %3630 = vrsqrt.f32 %v2513_v23 }
0x1b12   : > { %3632 = vrsqrt.f32 %v2512_v22 }
0x1b1b   : > { %v3631_v32 = vpop.eup %3630 }
0x1b1c   : > { %v3633_v33 = vpop.eup %3632  ;;  %v2517_v34 = vmul.f32 %v3631_v32, %v2501_v13 }
0x1b1d   : > { %v2516_v35 = vmul.f32 %v3633_v33, %v2500_v24 }
0x1b1e   : > { %v2519_v36 = vmul.f32 %v2914_v54, %v2517_v34 }
0x1b1f   : > { %v2518_v37 = vmul.f32 %v2914_v54, %v2516_v35 }
0x1b20   : > { %v2521_v38 = vadd.f32 %v2915_v47, %v2519_v36 }
0x1b21   : > { %v2520_v39 = vadd.f32 %v2915_v47, %v2518_v37 }
0x1b23   : > { %v3404_v40 = vpack.c.bf16 %v2521_v38, %v2520_v39 }
0x1b25   : > { %3405 = vmatprep.subr.bf16.mxu0 %v3404_v40 }
0x1b26   : > { %3407 = vmatpush3.bf16.msra.mxu0 %v3404_v40 }
0x1b29   : > { %3249 = vmatmul.mubr.msk.f32.vlgmr.msra.gmra.mrb[24].mxu0 %vm365_vm3, %v2523_v41 }
0x1b2a   : > { %3251 = vmatprep.mubr.msk.f32.mxu0 %vm365_vm3, %v2524_v42 }
0x1b2d   : > { %3252 = vmatmul.mubr.msk.f32.gmra.mrb[26].mxu0 %vm365_vm3, %v2525_v43 }
0x1bfc   : > { %v3250_v16 = vpop.f32.mrb[24].mxu0 }
0x1bfd   : > { %v2604_v44 = vpop.f32.mrb[25].mxu0 }
0x1bfe   : > { %3262 = vmatprep.mubr.msk.f32.mxu1 %vm189_vm0, %v2604_v44 }
0x1bff   : > { %3263 = vmatmul.mubr.msk.f32.vlgmr.msra.gmra.mrb[22].mxu1 %vm189_vm0, %v3250_v16 }
0x1c00   : > { %v3253_v45 = vpop.f32.mrb[26].mxu0 }
0x1c01   : > { %v2614_v46 = vpop.f32.mrb[27].mxu0 }
0x1c02   : > { %3265 = vmatprep.mubr.msk.f32.mxu1 %vm189_vm0, %v2614_v46 }
0x1c03   : > { %3266 = vmatmul.mubr.msk.f32.gmra.mrb[24].mxu1 %vm189_vm0, %v3253_v45 }
0x1cd2   : > { %v3264_v7 = vpop.f32.mrb[22].mxu1 }
0x1cd3   : > { %v2715_v49 = vadd.f32 %v3264_v7, %v2922_v5  ;;  %v2709_v11 = vpop.f32.mrb[23].mxu1 }
0x1cd4   : > { %v2710_v12 = vadd.f32 %v2922_v5, %v2709_v11 }
0x1cd5   : > { %v2928_v51 = vmul.f32 -1.442695, %v2715_v49 }
0x1cd6   : > { %v2927_v52 = vmul.f32 -1.442695, %v2710_v12  ;;  %v3267_v53 = vpop.f32.mrb[24].mxu1 }
0x1cd7   : > { %3634 = vpow2.f32 %v2928_v51  ;;  %v2725_v54 = vadd.f32 %v3267_v53, %v2922_v5  ;;  %v2719_v55 = vpop.f32.mrb[25].mxu1 }
0x1cd8   : > { %3636 = vpow2.f32 %v2927_v52  ;;  %v2720_v47 = vadd.f32 %v2922_v5, %v2719_v55 }
0x1cd9   : > { %v2930_v56 = vmul.f32 -1.442695, %v2725_v54 }
0x1cda   : > { %v2929_v57 = vmul.f32 -1.442695, %v2720_v47 }
0x1cdb   : > { %3638 = vpow2.f32 %v2930_v56 }
0x1cdc   : > { %3640 = vpow2.f32 %v2929_v57 }
0x1ce1   : > { %v3635_v58 = vpop.eup %3634 }
0x1ce2   : > { %v3637_v59 = vpop.eup %3636  ;;  %v2744_v60 = vadd.f32 1.0, %v3635_v58 }
0x1ce3   : > { %v2743_v61 = vadd.f32 1.0, %v3637_v59 }
0x1ce4   : > { %3642 = vrcp.f32 %v2744_v60 }
0x1ce5   : > { %v3639_v63 = vpop.eup %3638  ;;  %3644 = vrcp.f32 %v2743_v61 }
0x1ce6   : > { %v3641_v0 = vpop.eup %3640  ;;  %v2746_v26 = vadd.f32 1.0, %v3639_v63 }
0x1ce7   : > { %v2745_v3 = vadd.f32 1.0, %v3641_v0 }
0x1ce8   : > { %3646 = vrcp.f32 %v2746_v26 }
0x1ce9   : > { %3648 = vrcp.f32 %v2745_v3 }
0x1cee   : > { %v3643_v1 = vpop.eup %3642 }
0x1cef   : > { %v3645_v6 = vpop.eup %3644  ;;  %v2756_v2 = vsel %vm2730_vm5, %v3643_v1, %v2715_v49 }
0x1cf0   : > { %2760 = vst [vmem:[%s178_s5 + $0x8] sm:$0xff] %v2756_v2  ;;  %v2755_v4 = vsel %vm2730_vm5, %v3645_v6, %v2710_v12 }
0x1cf1   : > { %2759 = vst [vmem:[%s178_s5] sm:$0xff] %v2755_v4 }
0x1cf2   : > { %v3647_v8 = vpop.eup %3646 }
0x1cf3   : > { %v3649_v9 = vpop.eup %3648  ;;  %v2758_v13 = vsel %vm2730_vm5, %v3647_v8, %v2725_v54 }
0x1cf4   : > { %2762 = vst [vmem:[%s178_s5 + $0x18] sm:$0xff] %v2758_v13  ;;  %v2757_v24 = vsel %vm2730_vm5, %v3649_v9, %v2720_v47 }
0x1cf5   : > { %2761 = vst [vmem:[%s178_s5 + $0x10] sm:$0xff] %v2757_v24 }
0x1cf6 PF: > { %p13_p1 = scmp.ge.s32.totalorder %s3825_s19, 4   ;;  %s4237_s9 = smov %s3738_s10 }
0x1cf7   : > { %s4238_s10 = smov %s3742_s11  ;;  %s4239_s11 = smov %s3854_s6 }
0x1cf8   : > { %s4240_s12 = smov %s3825_s19  ;;  %15 = sbr.rel (!%p13_p1) target bundleno = 4 (0x4), region = 72 }
0x1cff   :  { %2784 = vsyncpa [#allocation3], 1 }
0x1d00   :  { %2786 = vsyncpa [#allocation3 + $0x1], 1 }
0x1d01   :  { %2787 = vsyncpa [#allocation5], 1 }

</bundles_post_ra>
